<compile_context>
chip_gen: v6e
topology: v6e:2x2x1
jax: 0.10.0
libtpu: 0.0.40
codegen_flags: <defaults>
</compile_context>

<pallas_src>
import jax
import jax.numpy as jnp
from jax import lax
from jax.experimental import pallas as pl
from jax.experimental.pallas import tpu as pltpu


# ----------------------------- fused kernel ----------------------------------

def make_fused_kernel(num_layers, T, B, H, d_in0, pad_in):
    """Args: x2d(f32), lstm_w(bf16 L,pad_in+H,4H), lstm_b(f32 L,1,4H),
             w1(bf16 H,F), head(f32 3,F), out_ref."""

    def kernel(x_ref, lw_ref, lb_ref, w1_ref, hv_ref, out_ref):
        x = x_ref[...]                                      # (T*B, D_in0) f32

        for layer in range(num_layers):
            d_in = d_in0 if layer == 0 else H
            w_slab = lw_ref[layer]                          # (pad_in+H, 4H) bf16
            wih = w_slab[0:d_in, :]                         # (d_in, 4H)
            whh = w_slab[pad_in:pad_in + H, :]              # (H, 4H)
            b = lb_ref[layer]                               # (1, 4H) f32

            # Input projection hoisted out of the recurrence: one tall bf16
            # matmul for all T steps, bias folded in once (g cols pre-scaled).
            xp = jnp.dot(x.astype(jnp.bfloat16), wih,
                         preferred_element_type=jnp.float32) + b   # (T*B,4H) f32

            h = jnp.zeros((B, H), jnp.float32)
            c = jnp.zeros((B, H), jnp.float32)
            hs = []

            # Static (fully unrolled) time loop — only the recurrent matmul and
            # one sigmoid pass remain on the serial critical path.
            for t in range(T):
                gates = xp[t * B:(t + 1) * B, :] + jnp.dot(
                    h.astype(jnp.bfloat16), whh,
                    preferred_element_type=jnp.float32)             # (B, 4H) f32

                # Single full-vreg EUP pass; g-gate columns were pre-scaled by
                # 2, so tanh(g) = 2*sigmoid(2g) - 1 is a VPU mul-add away.
                sig = jax.nn.sigmoid(gates)
                i_g = sig[:, 0 * H:1 * H]
                f_g = sig[:, 1 * H:2 * H]
                g_g = 2.0 * sig[:, 2 * H:3 * H] - 1.0
                o_g = sig[:, 3 * H:4 * H]

                c = f_g * c + i_g * g_g
                tanh_c = 2.0 * jax.nn.sigmoid(2.0 * c) - 1.0        # (B, H)
                h = o_g * tanh_c
                hs.append(h)

            x = jnp.concatenate(hs, axis=0)                 # (T*B, H), in vregs

        # MLP head: fc1 + ReLU on the MXU (bf16 in, f32 acc), fc2 (F -> 1) as a
        # VPU multiply + lane reduction instead of an N=1 MXU matmul.
        b1 = hv_ref[0:1, :]                                 # (1, F)
        w2 = hv_ref[1:2, :]                                 # (1, F)
        b2 = hv_ref[2:3, 0:1]                               # (1, 1)
        z = jnp.dot(x.astype(jnp.bfloat16), w1_ref[...],
                    preferred_element_type=jnp.float32) + b1        # (T*B, F)
        z = jnp.maximum(z, 0.0)
        y = jnp.sum(z * w2, axis=-1, keepdims=True) + b2            # (T*B, 1)

        out_ref[...] = y                                    # single dense store

    return kernel


# ----------------------------- param packing ---------------------------------

def pack_params(params, input_size, hidden_size):
    """Pack LSTM/MLP params into a few VMEM-friendly slabs; pre-scale g-gate
    columns by 2 (for the tanh(x) = 2*sigmoid(2x)-1 trick) and cast matmul
    weights to bf16."""
    H = hidden_size
    L = len(params["lstm"])
    pad_in = ((max(input_size, H) + 7) // 8) * 8

    g_scale = jnp.ones((1, 4 * H), jnp.float32).at[:, 2 * H:3 * H].set(2.0)

    w_slabs, b_slabs = [], []
    for layer, (wih_t, whh_t, bias) in enumerate(params["lstm"]):
        d_in = input_size if layer == 0 else H
        wih_s = wih_t * g_scale                             # (d_in, 4H)
        whh_s = whh_t * g_scale                             # (H, 4H)
        b_s = bias * g_scale                                # (1, 4H)
        wih_pad = jnp.zeros((pad_in, 4 * H), jnp.float32).at[:d_in, :].set(wih_s)
        w_slabs.append(jnp.concatenate([wih_pad, whh_s], axis=0))
        b_slabs.append(b_s)

    lstm_w = jnp.stack(w_slabs, axis=0).astype(jnp.bfloat16)   # (L, pad_in+H, 4H)
    lstm_b = jnp.stack(b_slabs, axis=0)                        # (L, 1, 4H) f32

    F = params["w1_t"].shape[1]
    w1 = params["w1_t"].astype(jnp.bfloat16)                   # (H, F)
    b2_row = jnp.zeros((1, F), jnp.float32).at[:, 0:1].set(params["b2"])
    head = jnp.concatenate([params["b1"], params["w2_row"], b2_row], axis=0)  # (3,F)

    return lstm_w, lstm_b, w1, head, pad_in


# ----------------------------- full model ------------------------------------

def lstm_mlp_forward(our_data, params):
    """our_data: (T, B, input_size) — dim 0 is time (nn.LSTM default)."""
    T, B, D = our_data.shape
    H = params["lstm"][0][1].shape[0]
    num_layers = len(params["lstm"])

    x2d = our_data.reshape(T * B, D)
    lstm_w, lstm_b, w1, head, pad_in = pack_params(params, D, H)

    out = pl.pallas_call(
        make_fused_kernel(num_layers, T, B, H, D, pad_in),
        out_shape=jax.ShapeDtypeStruct((T * B, 1), jnp.float32),
    )(x2d, lstm_w, lstm_b, w1, head)

    return out.reshape(T, B, 1)


# ----------------------------- pure-JAX reference -----------------------------

def lstm_mlp_reference(our_data, params):
    h = our_data
    for (wih_t, whh_t, bias) in params["lstm"]:
        T, B, _ = h.shape
        H = whh_t.shape[0]

        def step(carry, x_t):
            h_prev, c_prev = carry
            gates = x_t @ wih_t + h_prev @ whh_t + bias
            i_g = jax.nn.sigmoid(gates[:, 0 * H:1 * H])
            f_g = jax.nn.sigmoid(gates[:, 1 * H:2 * H])
            g_g = jnp.tanh(gates[:, 2 * H:3 * H])
            o_g = jax.nn.sigmoid(gates[:, 3 * H:4 * H])
            c_new = f_g * c_prev + i_g * g_g
            h_new = o_g * jnp.tanh(c_new)
            return (h_new, c_new), h_new

        init = (jnp.zeros((B, H), jnp.float32), jnp.zeros((B, H), jnp.float32))
        _, h = lax.scan(step, init, h)
    z = jnp.maximum(h @ params["w1_t"] + params["b1"], 0.0)
    return z @ params["w2_row"].T + params["b2"]


# ----------------------------- params ----------------------------------------

def init_params(key, num_layers, input_size, hidden_size, fc_size):
    """Deterministic init matching PyTorch parameter shapes (weights pre-transposed)."""
    params = {"lstm": []}
    k = 1.0 / jnp.sqrt(hidden_size)
    for layer in range(num_layers):
        d_in = input_size if layer == 0 else hidden_size
        key, k1, k2, k3, k4 = jax.random.split(key, 5)
        w_ih = jax.random.uniform(k1, (4 * hidden_size, d_in), jnp.float32, -k, k)
        w_hh = jax.random.uniform(k2, (4 * hidden_size, hidden_size), jnp.float32, -k, k)
        b_ih = jax.random.uniform(k3, (4 * hidden_size,), jnp.float32, -k, k)
        b_hh = jax.random.uniform(k4, (4 * hidden_size,), jnp.float32, -k, k)
        params["lstm"].append((w_ih.T, w_hh.T, (b_ih + b_hh)[None, :]))
    kf = 1.0 / jnp.sqrt(hidden_size)
    key, k1, k2 = jax.random.split(key, 3)
    w1 = jax.random.uniform(k1, (fc_size, hidden_size), jnp.float32, -kf, kf)
    b1 = jax.random.uniform(k2, (fc_size,), jnp.float32, -kf, kf)
    kf2 = 1.0 / jnp.sqrt(fc_size)
    key, k1, k2 = jax.random.split(key, 3)
    w2 = jax.random.uniform(k1, (1, fc_size), jnp.float32, -kf2, kf2)
    b2 = jax.random.uniform(k2, (1,), jnp.float32, -kf2, kf2)
    params["w1_t"] = w1.T                 # (H, F)
    params["b1"] = b1[None, :]            # (1, F)
    params["w2_row"] = w2                 # (1, F)  — used as a row for VPU reduce
    params["b2"] = b2[None, :]            # (1, 1)
    return params


if __name__ == "__main__":
    # small shapes consistent with the module: our_data (T=8, B=8, input=16)
    num_layers, input_size, hidden_size, fc_size = 2, 16, 32, 16
    T, B = 8, 8

    key = jax.random.PRNGKey(0)
    key, kx = jax.random.split(key)
    our_data = jax.random.normal(kx, (T, B, input_size), jnp.float32)

    params = init_params(key, num_layers, input_size, hidden_size, fc_size)

    out = lstm_mlp_forward(our_data, params)
    out = jax.block_until_ready(out)

    ref = jax.block_until_ready(lstm_mlp_reference(our_data, params))
    assert out.shape == (T, B, 1), out.shape
    assert jnp.allclose(out, ref, atol=2e-2, rtol=2e-2), "mismatch vs reference"

    print("KERNEL_OK")
</pallas_src>

<mosaic_0001>
module attributes {stable_mosaic.version = 11 : i64} {
  func.func @kernel(%arg0: memref<64x16xf32, #tpu.memory_space<vmem>>, %arg1: memref<2x64x128xbf16, #tpu.memory_space<vmem>>, %arg2: memref<2x1x128xf32, #tpu.memory_space<vmem>>, %arg3: memref<32x16xbf16, #tpu.memory_space<vmem>>, %arg4: memref<3x16xf32, #tpu.memory_space<vmem>>, %arg5: memref<64x1xf32, #tpu.memory_space<vmem>>) attributes {dimension_semantics = [], scalar_prefetch = 0 : i64, scratch_operands = 0 : i64, tpu.core_type = #tpu.core_type<tc>} {
    %c0 = arith.constant 0 : index
    %c0_0 = arith.constant 0 : index
    %0 = vector.load %arg0[%c0, %c0_0] : memref<64x16xf32, #tpu.memory_space<vmem>>, vector<64x16xf32>
    %c0_1 = arith.constant 0 : index
    %c0_2 = arith.constant 0 : index
    %c0_3 = arith.constant 0 : index
    %1 = vector.load %arg1[%c0_1, %c0_2, %c0_3] : memref<2x64x128xbf16, #tpu.memory_space<vmem>>, vector<1x64x128xbf16>
    %2 = vector.shape_cast %1 : vector<1x64x128xbf16> to vector<64x128xbf16>
    %3 = vector.extract_strided_slice %2 {offsets = [0, 0], sizes = [16, 128], strides = [1, 1]} : vector<64x128xbf16> to vector<16x128xbf16>
    %4 = vector.extract_strided_slice %2 {offsets = [32, 0], sizes = [32, 128], strides = [1, 1]} : vector<64x128xbf16> to vector<32x128xbf16>
    %c0_4 = arith.constant 0 : index
    %c0_5 = arith.constant 0 : index
    %c0_6 = arith.constant 0 : index
    %5 = vector.load %arg2[%c0_4, %c0_5, %c0_6] : memref<2x1x128xf32, #tpu.memory_space<vmem>>, vector<1x1x128xf32>
    %6 = vector.shape_cast %5 : vector<1x1x128xf32> to vector<1x128xf32>
    %7 = arith.truncf %0 : vector<64x16xf32> to vector<64x16xbf16>
    %cst = arith.constant dense<0.000000e+00> : vector<64x128xf32>
    %8 = tpu.matmul %7, %3, %cst {dimension_numbers = #tpu.dot_dimension_numbers<[1], [0], [0], [1], [0, 0, 1, 1], [], []>} : vector<64x16xbf16>, vector<16x128xbf16>, vector<64x128xf32> -> vector<64x128xf32>
    %9 = vector.broadcast %6 : vector<1x128xf32> to vector<64x128xf32>
    %10 = arith.addf %8, %9 : vector<64x128xf32>
    %cst_7 = arith.constant 0.000000e+00 : f32
    %11 = vector.broadcast %cst_7 : f32 to vector<8x32xf32>
    %cst_8 = arith.constant 0.000000e+00 : f32
    %12 = vector.broadcast %cst_8 : f32 to vector<8x32xf32>
    %13 = vector.extract_strided_slice %10 {offsets = [0, 0], sizes = [8, 128], strides = [1, 1]} : vector<64x128xf32> to vector<8x128xf32>
    %14 = arith.truncf %11 : vector<8x32xf32> to vector<8x32xbf16>
    %cst_9 = arith.constant dense<0.000000e+00> : vector<8x128xf32>
    %15 = tpu.matmul %14, %4, %cst_9 {dimension_numbers = #tpu.dot_dimension_numbers<[1], [0], [0], [1], [0, 0, 1, 1], [], []>} : vector<8x32xbf16>, vector<32x128xbf16>, vector<8x128xf32> -> vector<8x128xf32>
    %16 = arith.addf %13, %15 : vector<8x128xf32>
    %17 = arith.negf %16 : vector<8x128xf32>
    %18 = math.exp %17 : vector<8x128xf32>
    %cst_10 = arith.constant 1.000000e+00 : f32
    %19 = vector.broadcast %cst_10 : f32 to vector<8x128xf32>
    %20 = arith.addf %19, %18 : vector<8x128xf32>
    %21 = arith.divf %19, %20 : vector<8x128xf32>
    %22 = vector.extract_strided_slice %21 {offsets = [0, 0], sizes = [8, 32], strides = [1, 1]} : vector<8x128xf32> to vector<8x32xf32>
    %23 = vector.extract_strided_slice %21 {offsets = [0, 32], sizes = [8, 32], strides = [1, 1]} : vector<8x128xf32> to vector<8x32xf32>
    %24 = vector.extract_strided_slice %21 {offsets = [0, 64], sizes = [8, 32], strides = [1, 1]} : vector<8x128xf32> to vector<8x32xf32>
    %cst_11 = arith.constant 2.000000e+00 : f32
    %25 = vector.broadcast %cst_11 : f32 to vector<8x32xf32>
    %26 = arith.mulf %25, %24 : vector<8x32xf32>
    %cst_12 = arith.constant 1.000000e+00 : f32
    %27 = vector.broadcast %cst_12 : f32 to vector<8x32xf32>
    %28 = arith.subf %26, %27 : vector<8x32xf32>
    %29 = vector.extract_strided_slice %21 {offsets = [0, 96], sizes = [8, 32], strides = [1, 1]} : vector<8x128xf32> to vector<8x32xf32>
    %30 = arith.mulf %23, %12 : vector<8x32xf32>
    %31 = arith.mulf %22, %28 : vector<8x32xf32>
    %32 = arith.addf %30, %31 : vector<8x32xf32>
    %cst_13 = arith.constant 2.000000e+00 : f32
    %33 = vector.broadcast %cst_13 : f32 to vector<8x32xf32>
    %34 = arith.mulf %33, %32 : vector<8x32xf32>
    %35 = arith.negf %34 : vector<8x32xf32>
    %36 = math.exp %35 : vector<8x32xf32>
    %cst_14 = arith.constant 1.000000e+00 : f32
    %37 = vector.broadcast %cst_14 : f32 to vector<8x32xf32>
    %38 = arith.addf %37, %36 : vector<8x32xf32>
    %39 = arith.divf %37, %38 : vector<8x32xf32>
    %cst_15 = arith.constant 2.000000e+00 : f32
    %40 = vector.broadcast %cst_15 : f32 to vector<8x32xf32>
    %41 = arith.mulf %40, %39 : vector<8x32xf32>
    %cst_16 = arith.constant 1.000000e+00 : f32
    %42 = vector.broadcast %cst_16 : f32 to vector<8x32xf32>
    %43 = arith.subf %41, %42 : vector<8x32xf32>
    %44 = arith.mulf %29, %43 : vector<8x32xf32>
    %45 = vector.extract_strided_slice %10 {offsets = [8, 0], sizes = [8, 128], strides = [1, 1]} : vector<64x128xf32> to vector<8x128xf32>
    %46 = arith.truncf %44 : vector<8x32xf32> to vector<8x32xbf16>
    %cst_17 = arith.constant dense<0.000000e+00> : vector<8x128xf32>
    %47 = tpu.matmul %46, %4, %cst_17 {dimension_numbers = #tpu.dot_dimension_numbers<[1], [0], [0], [1], [0, 0, 1, 1], [], []>} : vector<8x32xbf16>, vector<32x128xbf16>, vector<8x128xf32> -> vector<8x128xf32>
    %48 = arith.addf %45, %47 : vector<8x128xf32>
    %49 = arith.negf %48 : vector<8x128xf32>
    %50 = math.exp %49 : vector<8x128xf32>
    %cst_18 = arith.constant 1.000000e+00 : f32
    %51 = vector.broadcast %cst_18 : f32 to vector<8x128xf32>
    %52 = arith.addf %51, %50 : vector<8x128xf32>
    %53 = arith.divf %51, %52 : vector<8x128xf32>
    %54 = vector.extract_strided_slice %53 {offsets = [0, 0], sizes = [8, 32], strides = [1, 1]} : vector<8x128xf32> to vector<8x32xf32>
    %55 = vector.extract_strided_slice %53 {offsets = [0, 32], sizes = [8, 32], strides = [1, 1]} : vector<8x128xf32> to vector<8x32xf32>
    %56 = vector.extract_strided_slice %53 {offsets = [0, 64], sizes = [8, 32], strides = [1, 1]} : vector<8x128xf32> to vector<8x32xf32>
    %cst_19 = arith.constant 2.000000e+00 : f32
    %57 = vector.broadcast %cst_19 : f32 to vector<8x32xf32>
    %58 = arith.mulf %57, %56 : vector<8x32xf32>
    %cst_20 = arith.constant 1.000000e+00 : f32
    %59 = vector.broadcast %cst_20 : f32 to vector<8x32xf32>
    %60 = arith.subf %58, %59 : vector<8x32xf32>
    %61 = vector.extract_strided_slice %53 {offsets = [0, 96], sizes = [8, 32], strides = [1, 1]} : vector<8x128xf32> to vector<8x32xf32>
    %62 = arith.mulf %55, %32 : vector<8x32xf32>
    %63 = arith.mulf %54, %60 : vector<8x32xf32>
    %64 = arith.addf %62, %63 : vector<8x32xf32>
    %cst_21 = arith.constant 2.000000e+00 : f32
    %65 = vector.broadcast %cst_21 : f32 to vector<8x32xf32>
    %66 = arith.mulf %65, %64 : vector<8x32xf32>
    %67 = arith.negf %66 : vector<8x32xf32>
    %68 = math.exp %67 : vector<8x32xf32>
    %cst_22 = arith.constant 1.000000e+00 : f32
    %69 = vector.broadcast %cst_22 : f32 to vector<8x32xf32>
    %70 = arith.addf %69, %68 : vector<8x32xf32>
    %71 = arith.divf %69, %70 : vector<8x32xf32>
    %cst_23 = arith.constant 2.000000e+00 : f32
    %72 = vector.broadcast %cst_23 : f32 to vector<8x32xf32>
    %73 = arith.mulf %72, %71 : vector<8x32xf32>
    %cst_24 = arith.constant 1.000000e+00 : f32
    %74 = vector.broadcast %cst_24 : f32 to vector<8x32xf32>
    %75 = arith.subf %73, %74 : vector<8x32xf32>
    %76 = arith.mulf %61, %75 : vector<8x32xf32>
    %77 = vector.extract_strided_slice %10 {offsets = [16, 0], sizes = [8, 128], strides = [1, 1]} : vector<64x128xf32> to vector<8x128xf32>
    %78 = arith.truncf %76 : vector<8x32xf32> to vector<8x32xbf16>
    %cst_25 = arith.constant dense<0.000000e+00> : vector<8x128xf32>
    %79 = tpu.matmul %78, %4, %cst_25 {dimension_numbers = #tpu.dot_dimension_numbers<[1], [0], [0], [1], [0, 0, 1, 1], [], []>} : vector<8x32xbf16>, vector<32x128xbf16>, vector<8x128xf32> -> vector<8x128xf32>
    %80 = arith.addf %77, %79 : vector<8x128xf32>
    %81 = arith.negf %80 : vector<8x128xf32>
    %82 = math.exp %81 : vector<8x128xf32>
    %cst_26 = arith.constant 1.000000e+00 : f32
    %83 = vector.broadcast %cst_26 : f32 to vector<8x128xf32>
    %84 = arith.addf %83, %82 : vector<8x128xf32>
    %85 = arith.divf %83, %84 : vector<8x128xf32>
    %86 = vector.extract_strided_slice %85 {offsets = [0, 0], sizes = [8, 32], strides = [1, 1]} : vector<8x128xf32> to vector<8x32xf32>
    %87 = vector.extract_strided_slice %85 {offsets = [0, 32], sizes = [8, 32], strides = [1, 1]} : vector<8x128xf32> to vector<8x32xf32>
    %88 = vector.extract_strided_slice %85 {offsets = [0, 64], sizes = [8, 32], strides = [1, 1]} : vector<8x128xf32> to vector<8x32xf32>
    %cst_27 = arith.constant 2.000000e+00 : f32
    %89 = vector.broadcast %cst_27 : f32 to vector<8x32xf32>
    %90 = arith.mulf %89, %88 : vector<8x32xf32>
    %cst_28 = arith.constant 1.000000e+00 : f32
    %91 = vector.broadcast %cst_28 : f32 to vector<8x32xf32>
    %92 = arith.subf %90, %91 : vector<8x32xf32>
    %93 = vector.extract_strided_slice %85 {offsets = [0, 96], sizes = [8, 32], strides = [1, 1]} : vector<8x128xf32> to vector<8x32xf32>
    %94 = arith.mulf %87, %64 : vector<8x32xf32>
    %95 = arith.mulf %86, %92 : vector<8x32xf32>
    %96 = arith.addf %94, %95 : vector<8x32xf32>
    %cst_29 = arith.constant 2.000000e+00 : f32
    %97 = vector.broadcast %cst_29 : f32 to vector<8x32xf32>
    %98 = arith.mulf %97, %96 : vector<8x32xf32>
    %99 = arith.negf %98 : vector<8x32xf32>
    %100 = math.exp %99 : vector<8x32xf32>
    %cst_30 = arith.constant 1.000000e+00 : f32
    %101 = vector.broadcast %cst_30 : f32 to vector<8x32xf32>
    %102 = arith.addf %101, %100 : vector<8x32xf32>
    %103 = arith.divf %101, %102 : vector<8x32xf32>
    %cst_31 = arith.constant 2.000000e+00 : f32
    %104 = vector.broadcast %cst_31 : f32 to vector<8x32xf32>
    %105 = arith.mulf %104, %103 : vector<8x32xf32>
    %cst_32 = arith.constant 1.000000e+00 : f32
    %106 = vector.broadcast %cst_32 : f32 to vector<8x32xf32>
    %107 = arith.subf %105, %106 : vector<8x32xf32>
    %108 = arith.mulf %93, %107 : vector<8x32xf32>
    %109 = vector.extract_strided_slice %10 {offsets = [24, 0], sizes = [8, 128], strides = [1, 1]} : vector<64x128xf32> to vector<8x128xf32>
    %110 = arith.truncf %108 : vector<8x32xf32> to vector<8x32xbf16>
    %cst_33 = arith.constant dense<0.000000e+00> : vector<8x128xf32>
    %111 = tpu.matmul %110, %4, %cst_33 {dimension_numbers = #tpu.dot_dimension_numbers<[1], [0], [0], [1], [0, 0, 1, 1], [], []>} : vector<8x32xbf16>, vector<32x128xbf16>, vector<8x128xf32> -> vector<8x128xf32>
    %112 = arith.addf %109, %111 : vector<8x128xf32>
    %113 = arith.negf %112 : vector<8x128xf32>
    %114 = math.exp %113 : vector<8x128xf32>
    %cst_34 = arith.constant 1.000000e+00 : f32
    %115 = vector.broadcast %cst_34 : f32 to vector<8x128xf32>
    %116 = arith.addf %115, %114 : vector<8x128xf32>
    %117 = arith.divf %115, %116 : vector<8x128xf32>
    %118 = vector.extract_strided_slice %117 {offsets = [0, 0], sizes = [8, 32], strides = [1, 1]} : vector<8x128xf32> to vector<8x32xf32>
    %119 = vector.extract_strided_slice %117 {offsets = [0, 32], sizes = [8, 32], strides = [1, 1]} : vector<8x128xf32> to vector<8x32xf32>
    %120 = vector.extract_strided_slice %117 {offsets = [0, 64], sizes = [8, 32], strides = [1, 1]} : vector<8x128xf32> to vector<8x32xf32>
    %cst_35 = arith.constant 2.000000e+00 : f32
    %121 = vector.broadcast %cst_35 : f32 to vector<8x32xf32>
    %122 = arith.mulf %121, %120 : vector<8x32xf32>
    %cst_36 = arith.constant 1.000000e+00 : f32
    %123 = vector.broadcast %cst_36 : f32 to vector<8x32xf32>
    %124 = arith.subf %122, %123 : vector<8x32xf32>
    %125 = vector.extract_strided_slice %117 {offsets = [0, 96], sizes = [8, 32], strides = [1, 1]} : vector<8x128xf32> to vector<8x32xf32>
    %126 = arith.mulf %119, %96 : vector<8x32xf32>
    %127 = arith.mulf %118, %124 : vector<8x32xf32>
    %128 = arith.addf %126, %127 : vector<8x32xf32>
    %cst_37 = arith.constant 2.000000e+00 : f32
    %129 = vector.broadcast %cst_37 : f32 to vector<8x32xf32>
    %130 = arith.mulf %129, %128 : vector<8x32xf32>
    %131 = arith.negf %130 : vector<8x32xf32>
    %132 = math.exp %131 : vector<8x32xf32>
    %cst_38 = arith.constant 1.000000e+00 : f32
    %133 = vector.broadcast %cst_38 : f32 to vector<8x32xf32>
    %134 = arith.addf %133, %132 : vector<8x32xf32>
    %135 = arith.divf %133, %134 : vector<8x32xf32>
    %cst_39 = arith.constant 2.000000e+00 : f32
    %136 = vector.broadcast %cst_39 : f32 to vector<8x32xf32>
    %137 = arith.mulf %136, %135 : vector<8x32xf32>
    %cst_40 = arith.constant 1.000000e+00 : f32
    %138 = vector.broadcast %cst_40 : f32 to vector<8x32xf32>
    %139 = arith.subf %137, %138 : vector<8x32xf32>
    %140 = arith.mulf %125, %139 : vector<8x32xf32>
    %141 = vector.extract_strided_slice %10 {offsets = [32, 0], sizes = [8, 128], strides = [1, 1]} : vector<64x128xf32> to vector<8x128xf32>
    %142 = arith.truncf %140 : vector<8x32xf32> to vector<8x32xbf16>
    %cst_41 = arith.constant dense<0.000000e+00> : vector<8x128xf32>
    %143 = tpu.matmul %142, %4, %cst_41 {dimension_numbers = #tpu.dot_dimension_numbers<[1], [0], [0], [1], [0, 0, 1, 1], [], []>} : vector<8x32xbf16>, vector<32x128xbf16>, vector<8x128xf32> -> vector<8x128xf32>
    %144 = arith.addf %141, %143 : vector<8x128xf32>
    %145 = arith.negf %144 : vector<8x128xf32>
    %146 = math.exp %145 : vector<8x128xf32>
    %cst_42 = arith.constant 1.000000e+00 : f32
    %147 = vector.broadcast %cst_42 : f32 to vector<8x128xf32>
    %148 = arith.addf %147, %146 : vector<8x128xf32>
    %149 = arith.divf %147, %148 : vector<8x128xf32>
    %150 = vector.extract_strided_slice %149 {offsets = [0, 0], sizes = [8, 32], strides = [1, 1]} : vector<8x128xf32> to vector<8x32xf32>
    %151 = vector.extract_strided_slice %149 {offsets = [0, 32], sizes = [8, 32], strides = [1, 1]} : vector<8x128xf32> to vector<8x32xf32>
    %152 = vector.extract_strided_slice %149 {offsets = [0, 64], sizes = [8, 32], strides = [1, 1]} : vector<8x128xf32> to vector<8x32xf32>
    %cst_43 = arith.constant 2.000000e+00 : f32
    %153 = vector.broadcast %cst_43 : f32 to vector<8x32xf32>
    %154 = arith.mulf %153, %152 : vector<8x32xf32>
    %cst_44 = arith.constant 1.000000e+00 : f32
    %155 = vector.broadcast %cst_44 : f32 to vector<8x32xf32>
    %156 = arith.subf %154, %155 : vector<8x32xf32>
    %157 = vector.extract_strided_slice %149 {offsets = [0, 96], sizes = [8, 32], strides = [1, 1]} : vector<8x128xf32> to vector<8x32xf32>
    %158 = arith.mulf %151, %128 : vector<8x32xf32>
    %159 = arith.mulf %150, %156 : vector<8x32xf32>
    %160 = arith.addf %158, %159 : vector<8x32xf32>
    %cst_45 = arith.constant 2.000000e+00 : f32
    %161 = vector.broadcast %cst_45 : f32 to vector<8x32xf32>
    %162 = arith.mulf %161, %160 : vector<8x32xf32>
    %163 = arith.negf %162 : vector<8x32xf32>
    %164 = math.exp %163 : vector<8x32xf32>
    %cst_46 = arith.constant 1.000000e+00 : f32
    %165 = vector.broadcast %cst_46 : f32 to vector<8x32xf32>
    %166 = arith.addf %165, %164 : vector<8x32xf32>
    %167 = arith.divf %165, %166 : vector<8x32xf32>
    %cst_47 = arith.constant 2.000000e+00 : f32
    %168 = vector.broadcast %cst_47 : f32 to vector<8x32xf32>
    %169 = arith.mulf %168, %167 : vector<8x32xf32>
    %cst_48 = arith.constant 1.000000e+00 : f32
    %170 = vector.broadcast %cst_48 : f32 to vector<8x32xf32>
    %171 = arith.subf %169, %170 : vector<8x32xf32>
    %172 = arith.mulf %157, %171 : vector<8x32xf32>
    %173 = vector.extract_strided_slice %10 {offsets = [40, 0], sizes = [8, 128], strides = [1, 1]} : vector<64x128xf32> to vector<8x128xf32>
    %174 = arith.truncf %172 : vector<8x32xf32> to vector<8x32xbf16>
    %cst_49 = arith.constant dense<0.000000e+00> : vector<8x128xf32>
    %175 = tpu.matmul %174, %4, %cst_49 {dimension_numbers = #tpu.dot_dimension_numbers<[1], [0], [0], [1], [0, 0, 1, 1], [], []>} : vector<8x32xbf16>, vector<32x128xbf16>, vector<8x128xf32> -> vector<8x128xf32>
    %176 = arith.addf %173, %175 : vector<8x128xf32>
    %177 = arith.negf %176 : vector<8x128xf32>
    %178 = math.exp %177 : vector<8x128xf32>
    %cst_50 = arith.constant 1.000000e+00 : f32
    %179 = vector.broadcast %cst_50 : f32 to vector<8x128xf32>
    %180 = arith.addf %179, %178 : vector<8x128xf32>
    %181 = arith.divf %179, %180 : vector<8x128xf32>
    %182 = vector.extract_strided_slice %181 {offsets = [0, 0], sizes = [8, 32], strides = [1, 1]} : vector<8x128xf32> to vector<8x32xf32>
    %183 = vector.extract_strided_slice %181 {offsets = [0, 32], sizes = [8, 32], strides = [1, 1]} : vector<8x128xf32> to vector<8x32xf32>
    %184 = vector.extract_strided_slice %181 {offsets = [0, 64], sizes = [8, 32], strides = [1, 1]} : vector<8x128xf32> to vector<8x32xf32>
    %cst_51 = arith.constant 2.000000e+00 : f32
    %185 = vector.broadcast %cst_51 : f32 to vector<8x32xf32>
    %186 = arith.mulf %185, %184 : vector<8x32xf32>
    %cst_52 = arith.constant 1.000000e+00 : f32
    %187 = vector.broadcast %cst_52 : f32 to vector<8x32xf32>
    %188 = arith.subf %186, %187 : vector<8x32xf32>
    %189 = vector.extract_strided_slice %181 {offsets = [0, 96], sizes = [8, 32], strides = [1, 1]} : vector<8x128xf32> to vector<8x32xf32>
    %190 = arith.mulf %183, %160 : vector<8x32xf32>
    %191 = arith.mulf %182, %188 : vector<8x32xf32>
    %192 = arith.addf %190, %191 : vector<8x32xf32>
    %cst_53 = arith.constant 2.000000e+00 : f32
    %193 = vector.broadcast %cst_53 : f32 to vector<8x32xf32>
    %194 = arith.mulf %193, %192 : vector<8x32xf32>
    %195 = arith.negf %194 : vector<8x32xf32>
    %196 = math.exp %195 : vector<8x32xf32>
    %cst_54 = arith.constant 1.000000e+00 : f32
    %197 = vector.broadcast %cst_54 : f32 to vector<8x32xf32>
    %198 = arith.addf %197, %196 : vector<8x32xf32>
    %199 = arith.divf %197, %198 : vector<8x32xf32>
    %cst_55 = arith.constant 2.000000e+00 : f32
    %200 = vector.broadcast %cst_55 : f32 to vector<8x32xf32>
    %201 = arith.mulf %200, %199 : vector<8x32xf32>
    %cst_56 = arith.constant 1.000000e+00 : f32
    %202 = vector.broadcast %cst_56 : f32 to vector<8x32xf32>
    %203 = arith.subf %201, %202 : vector<8x32xf32>
    %204 = arith.mulf %189, %203 : vector<8x32xf32>
    %205 = vector.extract_strided_slice %10 {offsets = [48, 0], sizes = [8, 128], strides = [1, 1]} : vector<64x128xf32> to vector<8x128xf32>
    %206 = arith.truncf %204 : vector<8x32xf32> to vector<8x32xbf16>
    %cst_57 = arith.constant dense<0.000000e+00> : vector<8x128xf32>
    %207 = tpu.matmul %206, %4, %cst_57 {dimension_numbers = #tpu.dot_dimension_numbers<[1], [0], [0], [1], [0, 0, 1, 1], [], []>} : vector<8x32xbf16>, vector<32x128xbf16>, vector<8x128xf32> -> vector<8x128xf32>
    %208 = arith.addf %205, %207 : vector<8x128xf32>
    %209 = arith.negf %208 : vector<8x128xf32>
    %210 = math.exp %209 : vector<8x128xf32>
    %cst_58 = arith.constant 1.000000e+00 : f32
    %211 = vector.broadcast %cst_58 : f32 to vector<8x128xf32>
    %212 = arith.addf %211, %210 : vector<8x128xf32>
    %213 = arith.divf %211, %212 : vector<8x128xf32>
    %214 = vector.extract_strided_slice %213 {offsets = [0, 0], sizes = [8, 32], strides = [1, 1]} : vector<8x128xf32> to vector<8x32xf32>
    %215 = vector.extract_strided_slice %213 {offsets = [0, 32], sizes = [8, 32], strides = [1, 1]} : vector<8x128xf32> to vector<8x32xf32>
    %216 = vector.extract_strided_slice %213 {offsets = [0, 64], sizes = [8, 32], strides = [1, 1]} : vector<8x128xf32> to vector<8x32xf32>
    %cst_59 = arith.constant 2.000000e+00 : f32
    %217 = vector.broadcast %cst_59 : f32 to vector<8x32xf32>
    %218 = arith.mulf %217, %216 : vector<8x32xf32>
    %cst_60 = arith.constant 1.000000e+00 : f32
    %219 = vector.broadcast %cst_60 : f32 to vector<8x32xf32>
    %220 = arith.subf %218, %219 : vector<8x32xf32>
    %221 = vector.extract_strided_slice %213 {offsets = [0, 96], sizes = [8, 32], strides = [1, 1]} : vector<8x128xf32> to vector<8x32xf32>
    %222 = arith.mulf %215, %192 : vector<8x32xf32>
    %223 = arith.mulf %214, %220 : vector<8x32xf32>
    %224 = arith.addf %222, %223 : vector<8x32xf32>
    %cst_61 = arith.constant 2.000000e+00 : f32
    %225 = vector.broadcast %cst_61 : f32 to vector<8x32xf32>
    %226 = arith.mulf %225, %224 : vector<8x32xf32>
    %227 = arith.negf %226 : vector<8x32xf32>
    %228 = math.exp %227 : vector<8x32xf32>
    %cst_62 = arith.constant 1.000000e+00 : f32
    %229 = vector.broadcast %cst_62 : f32 to vector<8x32xf32>
    %230 = arith.addf %229, %228 : vector<8x32xf32>
    %231 = arith.divf %229, %230 : vector<8x32xf32>
    %cst_63 = arith.constant 2.000000e+00 : f32
    %232 = vector.broadcast %cst_63 : f32 to vector<8x32xf32>
    %233 = arith.mulf %232, %231 : vector<8x32xf32>
    %cst_64 = arith.constant 1.000000e+00 : f32
    %234 = vector.broadcast %cst_64 : f32 to vector<8x32xf32>
    %235 = arith.subf %233, %234 : vector<8x32xf32>
    %236 = arith.mulf %221, %235 : vector<8x32xf32>
    %237 = vector.extract_strided_slice %10 {offsets = [56, 0], sizes = [8, 128], strides = [1, 1]} : vector<64x128xf32> to vector<8x128xf32>
    %238 = arith.truncf %236 : vector<8x32xf32> to vector<8x32xbf16>
    %cst_65 = arith.constant dense<0.000000e+00> : vector<8x128xf32>
    %239 = tpu.matmul %238, %4, %cst_65 {dimension_numbers = #tpu.dot_dimension_numbers<[1], [0], [0], [1], [0, 0, 1, 1], [], []>} : vector<8x32xbf16>, vector<32x128xbf16>, vector<8x128xf32> -> vector<8x128xf32>
    %240 = arith.addf %237, %239 : vector<8x128xf32>
    %241 = arith.negf %240 : vector<8x128xf32>
    %242 = math.exp %241 : vector<8x128xf32>
    %cst_66 = arith.constant 1.000000e+00 : f32
    %243 = vector.broadcast %cst_66 : f32 to vector<8x128xf32>
    %244 = arith.addf %243, %242 : vector<8x128xf32>
    %245 = arith.divf %243, %244 : vector<8x128xf32>
    %246 = vector.extract_strided_slice %245 {offsets = [0, 0], sizes = [8, 32], strides = [1, 1]} : vector<8x128xf32> to vector<8x32xf32>
    %247 = vector.extract_strided_slice %245 {offsets = [0, 32], sizes = [8, 32], strides = [1, 1]} : vector<8x128xf32> to vector<8x32xf32>
    %248 = vector.extract_strided_slice %245 {offsets = [0, 64], sizes = [8, 32], strides = [1, 1]} : vector<8x128xf32> to vector<8x32xf32>
    %cst_67 = arith.constant 2.000000e+00 : f32
    %249 = vector.broadcast %cst_67 : f32 to vector<8x32xf32>
    %250 = arith.mulf %249, %248 : vector<8x32xf32>
    %cst_68 = arith.constant 1.000000e+00 : f32
    %251 = vector.broadcast %cst_68 : f32 to vector<8x32xf32>
    %252 = arith.subf %250, %251 : vector<8x32xf32>
    %253 = vector.extract_strided_slice %245 {offsets = [0, 96], sizes = [8, 32], strides = [1, 1]} : vector<8x128xf32> to vector<8x32xf32>
    %254 = arith.mulf %247, %224 : vector<8x32xf32>
    %255 = arith.mulf %246, %252 : vector<8x32xf32>
    %256 = arith.addf %254, %255 : vector<8x32xf32>
    %cst_69 = arith.constant 2.000000e+00 : f32
    %257 = vector.broadcast %cst_69 : f32 to vector<8x32xf32>
    %258 = arith.mulf %257, %256 : vector<8x32xf32>
    %259 = arith.negf %258 : vector<8x32xf32>
    %260 = math.exp %259 : vector<8x32xf32>
    %cst_70 = arith.constant 1.000000e+00 : f32
    %261 = vector.broadcast %cst_70 : f32 to vector<8x32xf32>
    %262 = arith.addf %261, %260 : vector<8x32xf32>
    %263 = arith.divf %261, %262 : vector<8x32xf32>
    %cst_71 = arith.constant 2.000000e+00 : f32
    %264 = vector.broadcast %cst_71 : f32 to vector<8x32xf32>
    %265 = arith.mulf %264, %263 : vector<8x32xf32>
    %cst_72 = arith.constant 1.000000e+00 : f32
    %266 = vector.broadcast %cst_72 : f32 to vector<8x32xf32>
    %267 = arith.subf %265, %266 : vector<8x32xf32>
    %268 = arith.mulf %253, %267 : vector<8x32xf32>
    %269 = tpu.concatenate %44, %76, %108, %140, %172, %204, %236, %268 in 0 : vector<8x32xf32>, vector<8x32xf32>, vector<8x32xf32>, vector<8x32xf32>, vector<8x32xf32>, vector<8x32xf32>, vector<8x32xf32>, vector<8x32xf32> -> vector<64x32xf32>
    %c1 = arith.constant 1 : index
    %c0_73 = arith.constant 0 : index
    %c0_74 = arith.constant 0 : index
    %270 = vector.load %arg1[%c1, %c0_73, %c0_74] : memref<2x64x128xbf16, #tpu.memory_space<vmem>>, vector<1x64x128xbf16>
    %271 = vector.shape_cast %270 : vector<1x64x128xbf16> to vector<64x128xbf16>
    %272 = vector.extract_strided_slice %271 {offsets = [0, 0], sizes = [32, 128], strides = [1, 1]} : vector<64x128xbf16> to vector<32x128xbf16>
    %273 = vector.extract_strided_slice %271 {offsets = [32, 0], sizes = [32, 128], strides = [1, 1]} : vector<64x128xbf16> to vector<32x128xbf16>
    %c1_75 = arith.constant 1 : index
    %c0_76 = arith.constant 0 : index
    %c0_77 = arith.constant 0 : index
    %274 = vector.load %arg2[%c1_75, %c0_76, %c0_77] : memref<2x1x128xf32, #tpu.memory_space<vmem>>, vector<1x1x128xf32>
    %275 = vector.shape_cast %274 : vector<1x1x128xf32> to vector<1x128xf32>
    %276 = arith.truncf %269 : vector<64x32xf32> to vector<64x32xbf16>
    %cst_78 = arith.constant dense<0.000000e+00> : vector<64x128xf32>
    %277 = tpu.matmul %276, %272, %cst_78 {dimension_numbers = #tpu.dot_dimension_numbers<[1], [0], [0], [1], [0, 0, 1, 1], [], []>} : vector<64x32xbf16>, vector<32x128xbf16>, vector<64x128xf32> -> vector<64x128xf32>
    %278 = vector.broadcast %275 : vector<1x128xf32> to vector<64x128xf32>
    %279 = arith.addf %277, %278 : vector<64x128xf32>
    %cst_79 = arith.constant 0.000000e+00 : f32
    %280 = vector.broadcast %cst_79 : f32 to vector<8x32xf32>
    %cst_80 = arith.constant 0.000000e+00 : f32
    %281 = vector.broadcast %cst_80 : f32 to vector<8x32xf32>
    %282 = vector.extract_strided_slice %279 {offsets = [0, 0], sizes = [8, 128], strides = [1, 1]} : vector<64x128xf32> to vector<8x128xf32>
    %283 = arith.truncf %280 : vector<8x32xf32> to vector<8x32xbf16>
    %cst_81 = arith.constant dense<0.000000e+00> : vector<8x128xf32>
    %284 = tpu.matmul %283, %273, %cst_81 {dimension_numbers = #tpu.dot_dimension_numbers<[1], [0], [0], [1], [0, 0, 1, 1], [], []>} : vector<8x32xbf16>, vector<32x128xbf16>, vector<8x128xf32> -> vector<8x128xf32>
    %285 = arith.addf %282, %284 : vector<8x128xf32>
    %286 = arith.negf %285 : vector<8x128xf32>
    %287 = math.exp %286 : vector<8x128xf32>
    %cst_82 = arith.constant 1.000000e+00 : f32
    %288 = vector.broadcast %cst_82 : f32 to vector<8x128xf32>
    %289 = arith.addf %288, %287 : vector<8x128xf32>
    %290 = arith.divf %288, %289 : vector<8x128xf32>
    %291 = vector.extract_strided_slice %290 {offsets = [0, 0], sizes = [8, 32], strides = [1, 1]} : vector<8x128xf32> to vector<8x32xf32>
    %292 = vector.extract_strided_slice %290 {offsets = [0, 32], sizes = [8, 32], strides = [1, 1]} : vector<8x128xf32> to vector<8x32xf32>
    %293 = vector.extract_strided_slice %290 {offsets = [0, 64], sizes = [8, 32], strides = [1, 1]} : vector<8x128xf32> to vector<8x32xf32>
    %cst_83 = arith.constant 2.000000e+00 : f32
    %294 = vector.broadcast %cst_83 : f32 to vector<8x32xf32>
    %295 = arith.mulf %294, %293 : vector<8x32xf32>
    %cst_84 = arith.constant 1.000000e+00 : f32
    %296 = vector.broadcast %cst_84 : f32 to vector<8x32xf32>
    %297 = arith.subf %295, %296 : vector<8x32xf32>
    %298 = vector.extract_strided_slice %290 {offsets = [0, 96], sizes = [8, 32], strides = [1, 1]} : vector<8x128xf32> to vector<8x32xf32>
    %299 = arith.mulf %292, %281 : vector<8x32xf32>
    %300 = arith.mulf %291, %297 : vector<8x32xf32>
    %301 = arith.addf %299, %300 : vector<8x32xf32>
    %cst_85 = arith.constant 2.000000e+00 : f32
    %302 = vector.broadcast %cst_85 : f32 to vector<8x32xf32>
    %303 = arith.mulf %302, %301 : vector<8x32xf32>
    %304 = arith.negf %303 : vector<8x32xf32>
    %305 = math.exp %304 : vector<8x32xf32>
    %cst_86 = arith.constant 1.000000e+00 : f32
    %306 = vector.broadcast %cst_86 : f32 to vector<8x32xf32>
    %307 = arith.addf %306, %305 : vector<8x32xf32>
    %308 = arith.divf %306, %307 : vector<8x32xf32>
    %cst_87 = arith.constant 2.000000e+00 : f32
    %309 = vector.broadcast %cst_87 : f32 to vector<8x32xf32>
    %310 = arith.mulf %309, %308 : vector<8x32xf32>
    %cst_88 = arith.constant 1.000000e+00 : f32
    %311 = vector.broadcast %cst_88 : f32 to vector<8x32xf32>
    %312 = arith.subf %310, %311 : vector<8x32xf32>
    %313 = arith.mulf %298, %312 : vector<8x32xf32>
    %314 = vector.extract_strided_slice %279 {offsets = [8, 0], sizes = [8, 128], strides = [1, 1]} : vector<64x128xf32> to vector<8x128xf32>
    %315 = arith.truncf %313 : vector<8x32xf32> to vector<8x32xbf16>
    %cst_89 = arith.constant dense<0.000000e+00> : vector<8x128xf32>
    %316 = tpu.matmul %315, %273, %cst_89 {dimension_numbers = #tpu.dot_dimension_numbers<[1], [0], [0], [1], [0, 0, 1, 1], [], []>} : vector<8x32xbf16>, vector<32x128xbf16>, vector<8x128xf32> -> vector<8x128xf32>
    %317 = arith.addf %314, %316 : vector<8x128xf32>
    %318 = arith.negf %317 : vector<8x128xf32>
    %319 = math.exp %318 : vector<8x128xf32>
    %cst_90 = arith.constant 1.000000e+00 : f32
    %320 = vector.broadcast %cst_90 : f32 to vector<8x128xf32>
    %321 = arith.addf %320, %319 : vector<8x128xf32>
    %322 = arith.divf %320, %321 : vector<8x128xf32>
    %323 = vector.extract_strided_slice %322 {offsets = [0, 0], sizes = [8, 32], strides = [1, 1]} : vector<8x128xf32> to vector<8x32xf32>
    %324 = vector.extract_strided_slice %322 {offsets = [0, 32], sizes = [8, 32], strides = [1, 1]} : vector<8x128xf32> to vector<8x32xf32>
    %325 = vector.extract_strided_slice %322 {offsets = [0, 64], sizes = [8, 32], strides = [1, 1]} : vector<8x128xf32> to vector<8x32xf32>
    %cst_91 = arith.constant 2.000000e+00 : f32
    %326 = vector.broadcast %cst_91 : f32 to vector<8x32xf32>
    %327 = arith.mulf %326, %325 : vector<8x32xf32>
    %cst_92 = arith.constant 1.000000e+00 : f32
    %328 = vector.broadcast %cst_92 : f32 to vector<8x32xf32>
    %329 = arith.subf %327, %328 : vector<8x32xf32>
    %330 = vector.extract_strided_slice %322 {offsets = [0, 96], sizes = [8, 32], strides = [1, 1]} : vector<8x128xf32> to vector<8x32xf32>
    %331 = arith.mulf %324, %301 : vector<8x32xf32>
    %332 = arith.mulf %323, %329 : vector<8x32xf32>
    %333 = arith.addf %331, %332 : vector<8x32xf32>
    %cst_93 = arith.constant 2.000000e+00 : f32
    %334 = vector.broadcast %cst_93 : f32 to vector<8x32xf32>
    %335 = arith.mulf %334, %333 : vector<8x32xf32>
    %336 = arith.negf %335 : vector<8x32xf32>
    %337 = math.exp %336 : vector<8x32xf32>
    %cst_94 = arith.constant 1.000000e+00 : f32
    %338 = vector.broadcast %cst_94 : f32 to vector<8x32xf32>
    %339 = arith.addf %338, %337 : vector<8x32xf32>
    %340 = arith.divf %338, %339 : vector<8x32xf32>
    %cst_95 = arith.constant 2.000000e+00 : f32
    %341 = vector.broadcast %cst_95 : f32 to vector<8x32xf32>
    %342 = arith.mulf %341, %340 : vector<8x32xf32>
    %cst_96 = arith.constant 1.000000e+00 : f32
    %343 = vector.broadcast %cst_96 : f32 to vector<8x32xf32>
    %344 = arith.subf %342, %343 : vector<8x32xf32>
    %345 = arith.mulf %330, %344 : vector<8x32xf32>
    %346 = vector.extract_strided_slice %279 {offsets = [16, 0], sizes = [8, 128], strides = [1, 1]} : vector<64x128xf32> to vector<8x128xf32>
    %347 = arith.truncf %345 : vector<8x32xf32> to vector<8x32xbf16>
    %cst_97 = arith.constant dense<0.000000e+00> : vector<8x128xf32>
    %348 = tpu.matmul %347, %273, %cst_97 {dimension_numbers = #tpu.dot_dimension_numbers<[1], [0], [0], [1], [0, 0, 1, 1], [], []>} : vector<8x32xbf16>, vector<32x128xbf16>, vector<8x128xf32> -> vector<8x128xf32>
    %349 = arith.addf %346, %348 : vector<8x128xf32>
    %350 = arith.negf %349 : vector<8x128xf32>
    %351 = math.exp %350 : vector<8x128xf32>
    %cst_98 = arith.constant 1.000000e+00 : f32
    %352 = vector.broadcast %cst_98 : f32 to vector<8x128xf32>
    %353 = arith.addf %352, %351 : vector<8x128xf32>
    %354 = arith.divf %352, %353 : vector<8x128xf32>
    %355 = vector.extract_strided_slice %354 {offsets = [0, 0], sizes = [8, 32], strides = [1, 1]} : vector<8x128xf32> to vector<8x32xf32>
    %356 = vector.extract_strided_slice %354 {offsets = [0, 32], sizes = [8, 32], strides = [1, 1]} : vector<8x128xf32> to vector<8x32xf32>
    %357 = vector.extract_strided_slice %354 {offsets = [0, 64], sizes = [8, 32], strides = [1, 1]} : vector<8x128xf32> to vector<8x32xf32>
    %cst_99 = arith.constant 2.000000e+00 : f32
    %358 = vector.broadcast %cst_99 : f32 to vector<8x32xf32>
    %359 = arith.mulf %358, %357 : vector<8x32xf32>
    %cst_100 = arith.constant 1.000000e+00 : f32
    %360 = vector.broadcast %cst_100 : f32 to vector<8x32xf32>
    %361 = arith.subf %359, %360 : vector<8x32xf32>
    %362 = vector.extract_strided_slice %354 {offsets = [0, 96], sizes = [8, 32], strides = [1, 1]} : vector<8x128xf32> to vector<8x32xf32>
    %363 = arith.mulf %356, %333 : vector<8x32xf32>
    %364 = arith.mulf %355, %361 : vector<8x32xf32>
    %365 = arith.addf %363, %364 : vector<8x32xf32>
    %cst_101 = arith.constant 2.000000e+00 : f32
    %366 = vector.broadcast %cst_101 : f32 to vector<8x32xf32>
    %367 = arith.mulf %366, %365 : vector<8x32xf32>
    %368 = arith.negf %367 : vector<8x32xf32>
    %369 = math.exp %368 : vector<8x32xf32>
    %cst_102 = arith.constant 1.000000e+00 : f32
    %370 = vector.broadcast %cst_102 : f32 to vector<8x32xf32>
    %371 = arith.addf %370, %369 : vector<8x32xf32>
    %372 = arith.divf %370, %371 : vector<8x32xf32>
    %cst_103 = arith.constant 2.000000e+00 : f32
    %373 = vector.broadcast %cst_103 : f32 to vector<8x32xf32>
    %374 = arith.mulf %373, %372 : vector<8x32xf32>
    %cst_104 = arith.constant 1.000000e+00 : f32
    %375 = vector.broadcast %cst_104 : f32 to vector<8x32xf32>
    %376 = arith.subf %374, %375 : vector<8x32xf32>
    %377 = arith.mulf %362, %376 : vector<8x32xf32>
    %378 = vector.extract_strided_slice %279 {offsets = [24, 0], sizes = [8, 128], strides = [1, 1]} : vector<64x128xf32> to vector<8x128xf32>
    %379 = arith.truncf %377 : vector<8x32xf32> to vector<8x32xbf16>
    %cst_105 = arith.constant dense<0.000000e+00> : vector<8x128xf32>
    %380 = tpu.matmul %379, %273, %cst_105 {dimension_numbers = #tpu.dot_dimension_numbers<[1], [0], [0], [1], [0, 0, 1, 1], [], []>} : vector<8x32xbf16>, vector<32x128xbf16>, vector<8x128xf32> -> vector<8x128xf32>
    %381 = arith.addf %378, %380 : vector<8x128xf32>
    %382 = arith.negf %381 : vector<8x128xf32>
    %383 = math.exp %382 : vector<8x128xf32>
    %cst_106 = arith.constant 1.000000e+00 : f32
    %384 = vector.broadcast %cst_106 : f32 to vector<8x128xf32>
    %385 = arith.addf %384, %383 : vector<8x128xf32>
    %386 = arith.divf %384, %385 : vector<8x128xf32>
    %387 = vector.extract_strided_slice %386 {offsets = [0, 0], sizes = [8, 32], strides = [1, 1]} : vector<8x128xf32> to vector<8x32xf32>
    %388 = vector.extract_strided_slice %386 {offsets = [0, 32], sizes = [8, 32], strides = [1, 1]} : vector<8x128xf32> to vector<8x32xf32>
    %389 = vector.extract_strided_slice %386 {offsets = [0, 64], sizes = [8, 32], strides = [1, 1]} : vector<8x128xf32> to vector<8x32xf32>
    %cst_107 = arith.constant 2.000000e+00 : f32
    %390 = vector.broadcast %cst_107 : f32 to vector<8x32xf32>
    %391 = arith.mulf %390, %389 : vector<8x32xf32>
    %cst_108 = arith.constant 1.000000e+00 : f32
    %392 = vector.broadcast %cst_108 : f32 to vector<8x32xf32>
    %393 = arith.subf %391, %392 : vector<8x32xf32>
    %394 = vector.extract_strided_slice %386 {offsets = [0, 96], sizes = [8, 32], strides = [1, 1]} : vector<8x128xf32> to vector<8x32xf32>
    %395 = arith.mulf %388, %365 : vector<8x32xf32>
    %396 = arith.mulf %387, %393 : vector<8x32xf32>
    %397 = arith.addf %395, %396 : vector<8x32xf32>
    %cst_109 = arith.constant 2.000000e+00 : f32
    %398 = vector.broadcast %cst_109 : f32 to vector<8x32xf32>
    %399 = arith.mulf %398, %397 : vector<8x32xf32>
    %400 = arith.negf %399 : vector<8x32xf32>
    %401 = math.exp %400 : vector<8x32xf32>
    %cst_110 = arith.constant 1.000000e+00 : f32
    %402 = vector.broadcast %cst_110 : f32 to vector<8x32xf32>
    %403 = arith.addf %402, %401 : vector<8x32xf32>
    %404 = arith.divf %402, %403 : vector<8x32xf32>
    %cst_111 = arith.constant 2.000000e+00 : f32
    %405 = vector.broadcast %cst_111 : f32 to vector<8x32xf32>
    %406 = arith.mulf %405, %404 : vector<8x32xf32>
    %cst_112 = arith.constant 1.000000e+00 : f32
    %407 = vector.broadcast %cst_112 : f32 to vector<8x32xf32>
    %408 = arith.subf %406, %407 : vector<8x32xf32>
    %409 = arith.mulf %394, %408 : vector<8x32xf32>
    %410 = vector.extract_strided_slice %279 {offsets = [32, 0], sizes = [8, 128], strides = [1, 1]} : vector<64x128xf32> to vector<8x128xf32>
    %411 = arith.truncf %409 : vector<8x32xf32> to vector<8x32xbf16>
    %cst_113 = arith.constant dense<0.000000e+00> : vector<8x128xf32>
    %412 = tpu.matmul %411, %273, %cst_113 {dimension_numbers = #tpu.dot_dimension_numbers<[1], [0], [0], [1], [0, 0, 1, 1], [], []>} : vector<8x32xbf16>, vector<32x128xbf16>, vector<8x128xf32> -> vector<8x128xf32>
    %413 = arith.addf %410, %412 : vector<8x128xf32>
    %414 = arith.negf %413 : vector<8x128xf32>
    %415 = math.exp %414 : vector<8x128xf32>
    %cst_114 = arith.constant 1.000000e+00 : f32
    %416 = vector.broadcast %cst_114 : f32 to vector<8x128xf32>
    %417 = arith.addf %416, %415 : vector<8x128xf32>
    %418 = arith.divf %416, %417 : vector<8x128xf32>
    %419 = vector.extract_strided_slice %418 {offsets = [0, 0], sizes = [8, 32], strides = [1, 1]} : vector<8x128xf32> to vector<8x32xf32>
    %420 = vector.extract_strided_slice %418 {offsets = [0, 32], sizes = [8, 32], strides = [1, 1]} : vector<8x128xf32> to vector<8x32xf32>
    %421 = vector.extract_strided_slice %418 {offsets = [0, 64], sizes = [8, 32], strides = [1, 1]} : vector<8x128xf32> to vector<8x32xf32>
    %cst_115 = arith.constant 2.000000e+00 : f32
    %422 = vector.broadcast %cst_115 : f32 to vector<8x32xf32>
    %423 = arith.mulf %422, %421 : vector<8x32xf32>
    %cst_116 = arith.constant 1.000000e+00 : f32
    %424 = vector.broadcast %cst_116 : f32 to vector<8x32xf32>
    %425 = arith.subf %423, %424 : vector<8x32xf32>
    %426 = vector.extract_strided_slice %418 {offsets = [0, 96], sizes = [8, 32], strides = [1, 1]} : vector<8x128xf32> to vector<8x32xf32>
    %427 = arith.mulf %420, %397 : vector<8x32xf32>
    %428 = arith.mulf %419, %425 : vector<8x32xf32>
    %429 = arith.addf %427, %428 : vector<8x32xf32>
    %cst_117 = arith.constant 2.000000e+00 : f32
    %430 = vector.broadcast %cst_117 : f32 to vector<8x32xf32>
    %431 = arith.mulf %430, %429 : vector<8x32xf32>
    %432 = arith.negf %431 : vector<8x32xf32>
    %433 = math.exp %432 : vector<8x32xf32>
    %cst_118 = arith.constant 1.000000e+00 : f32
    %434 = vector.broadcast %cst_118 : f32 to vector<8x32xf32>
    %435 = arith.addf %434, %433 : vector<8x32xf32>
    %436 = arith.divf %434, %435 : vector<8x32xf32>
    %cst_119 = arith.constant 2.000000e+00 : f32
    %437 = vector.broadcast %cst_119 : f32 to vector<8x32xf32>
    %438 = arith.mulf %437, %436 : vector<8x32xf32>
    %cst_120 = arith.constant 1.000000e+00 : f32
    %439 = vector.broadcast %cst_120 : f32 to vector<8x32xf32>
    %440 = arith.subf %438, %439 : vector<8x32xf32>
    %441 = arith.mulf %426, %440 : vector<8x32xf32>
    %442 = vector.extract_strided_slice %279 {offsets = [40, 0], sizes = [8, 128], strides = [1, 1]} : vector<64x128xf32> to vector<8x128xf32>
    %443 = arith.truncf %441 : vector<8x32xf32> to vector<8x32xbf16>
    %cst_121 = arith.constant dense<0.000000e+00> : vector<8x128xf32>
    %444 = tpu.matmul %443, %273, %cst_121 {dimension_numbers = #tpu.dot_dimension_numbers<[1], [0], [0], [1], [0, 0, 1, 1], [], []>} : vector<8x32xbf16>, vector<32x128xbf16>, vector<8x128xf32> -> vector<8x128xf32>
    %445 = arith.addf %442, %444 : vector<8x128xf32>
    %446 = arith.negf %445 : vector<8x128xf32>
    %447 = math.exp %446 : vector<8x128xf32>
    %cst_122 = arith.constant 1.000000e+00 : f32
    %448 = vector.broadcast %cst_122 : f32 to vector<8x128xf32>
    %449 = arith.addf %448, %447 : vector<8x128xf32>
    %450 = arith.divf %448, %449 : vector<8x128xf32>
    %451 = vector.extract_strided_slice %450 {offsets = [0, 0], sizes = [8, 32], strides = [1, 1]} : vector<8x128xf32> to vector<8x32xf32>
    %452 = vector.extract_strided_slice %450 {offsets = [0, 32], sizes = [8, 32], strides = [1, 1]} : vector<8x128xf32> to vector<8x32xf32>
    %453 = vector.extract_strided_slice %450 {offsets = [0, 64], sizes = [8, 32], strides = [1, 1]} : vector<8x128xf32> to vector<8x32xf32>
    %cst_123 = arith.constant 2.000000e+00 : f32
    %454 = vector.broadcast %cst_123 : f32 to vector<8x32xf32>
    %455 = arith.mulf %454, %453 : vector<8x32xf32>
    %cst_124 = arith.constant 1.000000e+00 : f32
    %456 = vector.broadcast %cst_124 : f32 to vector<8x32xf32>
    %457 = arith.subf %455, %456 : vector<8x32xf32>
    %458 = vector.extract_strided_slice %450 {offsets = [0, 96], sizes = [8, 32], strides = [1, 1]} : vector<8x128xf32> to vector<8x32xf32>
    %459 = arith.mulf %452, %429 : vector<8x32xf32>
    %460 = arith.mulf %451, %457 : vector<8x32xf32>
    %461 = arith.addf %459, %460 : vector<8x32xf32>
    %cst_125 = arith.constant 2.000000e+00 : f32
    %462 = vector.broadcast %cst_125 : f32 to vector<8x32xf32>
    %463 = arith.mulf %462, %461 : vector<8x32xf32>
    %464 = arith.negf %463 : vector<8x32xf32>
    %465 = math.exp %464 : vector<8x32xf32>
    %cst_126 = arith.constant 1.000000e+00 : f32
    %466 = vector.broadcast %cst_126 : f32 to vector<8x32xf32>
    %467 = arith.addf %466, %465 : vector<8x32xf32>
    %468 = arith.divf %466, %467 : vector<8x32xf32>
    %cst_127 = arith.constant 2.000000e+00 : f32
    %469 = vector.broadcast %cst_127 : f32 to vector<8x32xf32>
    %470 = arith.mulf %469, %468 : vector<8x32xf32>
    %cst_128 = arith.constant 1.000000e+00 : f32
    %471 = vector.broadcast %cst_128 : f32 to vector<8x32xf32>
    %472 = arith.subf %470, %471 : vector<8x32xf32>
    %473 = arith.mulf %458, %472 : vector<8x32xf32>
    %474 = vector.extract_strided_slice %279 {offsets = [48, 0], sizes = [8, 128], strides = [1, 1]} : vector<64x128xf32> to vector<8x128xf32>
    %475 = arith.truncf %473 : vector<8x32xf32> to vector<8x32xbf16>
    %cst_129 = arith.constant dense<0.000000e+00> : vector<8x128xf32>
    %476 = tpu.matmul %475, %273, %cst_129 {dimension_numbers = #tpu.dot_dimension_numbers<[1], [0], [0], [1], [0, 0, 1, 1], [], []>} : vector<8x32xbf16>, vector<32x128xbf16>, vector<8x128xf32> -> vector<8x128xf32>
    %477 = arith.addf %474, %476 : vector<8x128xf32>
    %478 = arith.negf %477 : vector<8x128xf32>
    %479 = math.exp %478 : vector<8x128xf32>
    %cst_130 = arith.constant 1.000000e+00 : f32
    %480 = vector.broadcast %cst_130 : f32 to vector<8x128xf32>
    %481 = arith.addf %480, %479 : vector<8x128xf32>
    %482 = arith.divf %480, %481 : vector<8x128xf32>
    %483 = vector.extract_strided_slice %482 {offsets = [0, 0], sizes = [8, 32], strides = [1, 1]} : vector<8x128xf32> to vector<8x32xf32>
    %484 = vector.extract_strided_slice %482 {offsets = [0, 32], sizes = [8, 32], strides = [1, 1]} : vector<8x128xf32> to vector<8x32xf32>
    %485 = vector.extract_strided_slice %482 {offsets = [0, 64], sizes = [8, 32], strides = [1, 1]} : vector<8x128xf32> to vector<8x32xf32>
    %cst_131 = arith.constant 2.000000e+00 : f32
    %486 = vector.broadcast %cst_131 : f32 to vector<8x32xf32>
    %487 = arith.mulf %486, %485 : vector<8x32xf32>
    %cst_132 = arith.constant 1.000000e+00 : f32
    %488 = vector.broadcast %cst_132 : f32 to vector<8x32xf32>
    %489 = arith.subf %487, %488 : vector<8x32xf32>
    %490 = vector.extract_strided_slice %482 {offsets = [0, 96], sizes = [8, 32], strides = [1, 1]} : vector<8x128xf32> to vector<8x32xf32>
    %491 = arith.mulf %484, %461 : vector<8x32xf32>
    %492 = arith.mulf %483, %489 : vector<8x32xf32>
    %493 = arith.addf %491, %492 : vector<8x32xf32>
    %cst_133 = arith.constant 2.000000e+00 : f32
    %494 = vector.broadcast %cst_133 : f32 to vector<8x32xf32>
    %495 = arith.mulf %494, %493 : vector<8x32xf32>
    %496 = arith.negf %495 : vector<8x32xf32>
    %497 = math.exp %496 : vector<8x32xf32>
    %cst_134 = arith.constant 1.000000e+00 : f32
    %498 = vector.broadcast %cst_134 : f32 to vector<8x32xf32>
    %499 = arith.addf %498, %497 : vector<8x32xf32>
    %500 = arith.divf %498, %499 : vector<8x32xf32>
    %cst_135 = arith.constant 2.000000e+00 : f32
    %501 = vector.broadcast %cst_135 : f32 to vector<8x32xf32>
    %502 = arith.mulf %501, %500 : vector<8x32xf32>
    %cst_136 = arith.constant 1.000000e+00 : f32
    %503 = vector.broadcast %cst_136 : f32 to vector<8x32xf32>
    %504 = arith.subf %502, %503 : vector<8x32xf32>
    %505 = arith.mulf %490, %504 : vector<8x32xf32>
    %506 = vector.extract_strided_slice %279 {offsets = [56, 0], sizes = [8, 128], strides = [1, 1]} : vector<64x128xf32> to vector<8x128xf32>
    %507 = arith.truncf %505 : vector<8x32xf32> to vector<8x32xbf16>
    %cst_137 = arith.constant dense<0.000000e+00> : vector<8x128xf32>
    %508 = tpu.matmul %507, %273, %cst_137 {dimension_numbers = #tpu.dot_dimension_numbers<[1], [0], [0], [1], [0, 0, 1, 1], [], []>} : vector<8x32xbf16>, vector<32x128xbf16>, vector<8x128xf32> -> vector<8x128xf32>
    %509 = arith.addf %506, %508 : vector<8x128xf32>
    %510 = arith.negf %509 : vector<8x128xf32>
    %511 = math.exp %510 : vector<8x128xf32>
    %cst_138 = arith.constant 1.000000e+00 : f32
    %512 = vector.broadcast %cst_138 : f32 to vector<8x128xf32>
    %513 = arith.addf %512, %511 : vector<8x128xf32>
    %514 = arith.divf %512, %513 : vector<8x128xf32>
    %515 = vector.extract_strided_slice %514 {offsets = [0, 0], sizes = [8, 32], strides = [1, 1]} : vector<8x128xf32> to vector<8x32xf32>
    %516 = vector.extract_strided_slice %514 {offsets = [0, 32], sizes = [8, 32], strides = [1, 1]} : vector<8x128xf32> to vector<8x32xf32>
    %517 = vector.extract_strided_slice %514 {offsets = [0, 64], sizes = [8, 32], strides = [1, 1]} : vector<8x128xf32> to vector<8x32xf32>
    %cst_139 = arith.constant 2.000000e+00 : f32
    %518 = vector.broadcast %cst_139 : f32 to vector<8x32xf32>
    %519 = arith.mulf %518, %517 : vector<8x32xf32>
    %cst_140 = arith.constant 1.000000e+00 : f32
    %520 = vector.broadcast %cst_140 : f32 to vector<8x32xf32>
    %521 = arith.subf %519, %520 : vector<8x32xf32>
    %522 = vector.extract_strided_slice %514 {offsets = [0, 96], sizes = [8, 32], strides = [1, 1]} : vector<8x128xf32> to vector<8x32xf32>
    %523 = arith.mulf %516, %493 : vector<8x32xf32>
    %524 = arith.mulf %515, %521 : vector<8x32xf32>
    %525 = arith.addf %523, %524 : vector<8x32xf32>
    %cst_141 = arith.constant 2.000000e+00 : f32
    %526 = vector.broadcast %cst_141 : f32 to vector<8x32xf32>
    %527 = arith.mulf %526, %525 : vector<8x32xf32>
    %528 = arith.negf %527 : vector<8x32xf32>
    %529 = math.exp %528 : vector<8x32xf32>
    %cst_142 = arith.constant 1.000000e+00 : f32
    %530 = vector.broadcast %cst_142 : f32 to vector<8x32xf32>
    %531 = arith.addf %530, %529 : vector<8x32xf32>
    %532 = arith.divf %530, %531 : vector<8x32xf32>
    %cst_143 = arith.constant 2.000000e+00 : f32
    %533 = vector.broadcast %cst_143 : f32 to vector<8x32xf32>
    %534 = arith.mulf %533, %532 : vector<8x32xf32>
    %cst_144 = arith.constant 1.000000e+00 : f32
    %535 = vector.broadcast %cst_144 : f32 to vector<8x32xf32>
    %536 = arith.subf %534, %535 : vector<8x32xf32>
    %537 = arith.mulf %522, %536 : vector<8x32xf32>
    %538 = tpu.concatenate %313, %345, %377, %409, %441, %473, %505, %537 in 0 : vector<8x32xf32>, vector<8x32xf32>, vector<8x32xf32>, vector<8x32xf32>, vector<8x32xf32>, vector<8x32xf32>, vector<8x32xf32>, vector<8x32xf32> -> vector<64x32xf32>
    %c0_145 = arith.constant 0 : index
    %c0_146 = arith.constant 0 : index
    %539 = vector.load %arg4[%c0_145, %c0_146] : memref<3x16xf32, #tpu.memory_space<vmem>>, vector<1x16xf32>
    %c1_147 = arith.constant 1 : index
    %c0_148 = arith.constant 0 : index
    %540 = vector.load %arg4[%c1_147, %c0_148] : memref<3x16xf32, #tpu.memory_space<vmem>>, vector<1x16xf32>
    %c2 = arith.constant 2 : index
    %c0_149 = arith.constant 0 : index
    %541 = vector.load %arg4[%c2, %c0_149] : memref<3x16xf32, #tpu.memory_space<vmem>>, vector<1x1xf32>
    %542 = arith.truncf %538 : vector<64x32xf32> to vector<64x32xbf16>
    %c0_150 = arith.constant 0 : index
    %c0_151 = arith.constant 0 : index
    %543 = vector.load %arg3[%c0_150, %c0_151] : memref<32x16xbf16, #tpu.memory_space<vmem>>, vector<32x16xbf16>
    %cst_152 = arith.constant dense<0.000000e+00> : vector<64x16xf32>
    %544 = tpu.matmul %542, %543, %cst_152 {dimension_numbers = #tpu.dot_dimension_numbers<[1], [0], [0], [1], [0, 0, 1, 1], [], []>} : vector<64x32xbf16>, vector<32x16xbf16>, vector<64x16xf32> -> vector<64x16xf32>
    %545 = vector.broadcast %539 : vector<1x16xf32> to vector<64x16xf32>
    %546 = arith.addf %544, %545 : vector<64x16xf32>
    %cst_153 = arith.constant 0.000000e+00 : f32
    %547 = vector.broadcast %cst_153 : f32 to vector<64x16xf32>
    %548 = arith.maximumf %546, %547 : vector<64x16xf32>
    %549 = vector.broadcast %540 : vector<1x16xf32> to vector<64x16xf32>
    %550 = arith.mulf %548, %549 : vector<64x16xf32>
    %cst_154 = arith.constant dense<0.000000e+00> : vector<64xf32>
    %551 = vector.multi_reduction <add>, %550, %cst_154 [1] : vector<64x16xf32> to vector<64xf32>
    %552 = vector.shape_cast %551 : vector<64xf32> to vector<64x1xf32>
    %553 = vector.broadcast %541 : vector<1x1xf32> to vector<64x1xf32>
    %554 = arith.addf %552, %553 : vector<64x1xf32>
    %c0_155 = arith.constant 0 : index
    %c0_156 = arith.constant 0 : index
    %555 = vector.load %arg5[%c0_155, %c0_156] : memref<64x1xf32, #tpu.memory_space<vmem>>, vector<64x1xf32>
    tpu.vector_store %arg5[%c0_155, %c0_156], %554 {strides = array<i32>} : memref<64x1xf32, #tpu.memory_space<vmem>>, vector<64x1xf32>,
    return
  }
}

</mosaic_0001>

<bundles_post_ra>
// kernel: tpu_custom_call.1
= control target key start
LH: loop header
LB: loop body
LE: loop exit
PB: predicated region body
PF: predicated region fallthrough
CT: control target
= control target key end

     0   :  { %vm52_vm0 = vcmask 130048   ;;  %v2231_v13 = vmov 0.0   ;;  %vm2232_vm1 = vmmov 0   ;;  %v2233_v16 = vmov 0   ;;  %s2234_s16 = smov 64   ;;  %s2235_s17 = smov 32   ;;  %s2699_s1 = inlined_call_operand.vmem [shape: bf16[2,64,128], index: 1, kind: input, shape index: {}]   ;;  %s2700_s0 = inlined_call_operand.vmem [shape: f32[64,16], index: 0, kind: input, shape index: {}]   ;;  %s2701_s2 = inlined_call_operand.vmem [shape: f32[2,1,128], index: 2, kind: input, shape index: {}]   ;;  %s2702_s3 = inlined_call_operand.vmem [shape: bf16[32,16], index: 3, kind: input, shape index: {}]   ;;  %s2703_s4 = inlined_call_operand.vmem [shape: f32[3,16], index: 4, kind: input, shape index: {}]   ;;  %s2704_s5 = inlined_call_operand.vmem [shape: f32[64,1], index: 5, kind: output, shape index: {}]  }
   0x1   :  { %v2094_v0 = vld [vmem:[%s2699_s1] sm:$0xff]   ;;  %v22_v2 = vld [vmem:[%s2700_s0 + $0x8] sm:$0xff]  ;;  %v23_v6 = vld [vmem:[%s2700_s0 + $0x10] sm:$0xff]  ;;  %vm142_vm2 = vcmask 261120   ;;  %vm1734_vm3 = vcmask 7168  }
   0x2   :  { %v21_v1 = vld [vmem:[%s2700_s0] sm:$0xff]  ;;  %1925 = vmatprep.subr.bf16.mxu0 %v2094_v0  ;;  %2087 = vmatprep.subr.bf16.mxu1 %v2094_v0  ;;  %v26_v5 = vld [vmem:[%s2700_s0 + $0x28] sm:$0xff]  ;;  %v24_v7 = vld [vmem:[%s2700_s0 + $0x18] sm:$0xff] }
   0x3   :  { %v25_v3 = vld [vmem:[%s2700_s0 + $0x20] sm:$0xff]  ;;  %v36_v4 = vpack.c.bf16 %v22_v2, %v21_v1  ;;  %1926 = vmatpush3.bf16.msra.mxu0 %v2094_v0  ;;  %2088 = vmatpush3.bf16.msra.mxu1 %v2094_v0  ;;  %v37_v9 = vpack.c.bf16 %v24_v7, %v23_v6  ;;  %v27_v10 = vld [vmem:[%s2700_s0 + $0x30] sm:$0xff]  ;;  %v28_v11 = vld [vmem:[%s2700_s0 + $0x38] sm:$0xff] }
   0x4   :  { %v38_v8 = vpack.c.bf16 %v26_v5, %v25_v3  ;;  %v39_v12 = vpack.c.bf16 %v28_v11, %v27_v10  ;;  %1935 = vmatprep.subr.bf16.mxu1 %v2231_v13  ;;  %v2298_v14 = vld [vmem:[%s2699_s1 + $0x18] sm:$0xff]   ;;  %v2304_v15 = vld [vmem:[%s2699_s1 + $0x10] sm:$0xff]   ;;  %1951 = vmatprep.subr.bf16.mxu0 %v2231_v13  ;;  %v1747_v17 = vld [vmem:[%s2701_s2] ss:$0 sm:$0xff] }
   0x5   :  { %1927 = vmatprep.mubr.msk.bf16.mxu0 %vm52_vm0, %v36_v4 }
   0x6   :  { %1931 = vmatprep.mubr.msk.bf16.mxu1 %vm52_vm0, %v38_v8  ;;  %1928 = vmatmul.mubr.msk.bf16.vlgmr.msra.gmra.mxu0 %vm52_vm0, %v37_v9 }
   0x7   :  { %1932 = vmatmul.mubr.msk.bf16.vlgmr.msra.gmra.mxu1 %vm52_vm0, %v39_v12  ;;  %1952 = vmatpush3.bf16.msra.mxu0 %v2298_v14 }
   0x8   :  { %1936 = vmatpush3.bf16.msra.mxu1 %v2298_v14  ;;  %1939 = vmatprep.mubr.msk.bf16.mxu1 %vm2232_vm1, %v2231_v13 }
   0x9   :  { %1937 = vmatprep.subr.bf16.mxu1 %v2231_v13  ;;  %1953 = vmatprep.subr.bf16.mxu0 %v2231_v13 }
   0xa   :  { %1955 = vmatprep.mubr.msk.bf16.mxu0 %vm2232_vm1, %v2231_v13 }
   0xb   :  { %1954 = vmatpush3.bf16.msra.mxu0 %v2304_v15 }
   0xc   :  { %1938 = vmatpush3.bf16.msra.mxu1 %v2304_v15  ;;  %1967 = vmatprep.subr.bf16.mxu0 %v2231_v13 }
   0xd   :  { %1943 = vmatprep.subr.bf16.mxu1 %v2231_v13 }
   0xf   :  { %1940 = vmatmul.mubr.bf16.vlgmr.msra.gmra.mxu1 %v2233_v16 }
  0x10   :  { %1944 = vmatpush3.bf16.msra.mxu1 %v2298_v14  ;;  %1947 = vmatprep.mubr.msk.bf16.mxu1 %vm2232_vm1, %v2231_v13 }
  0x11   :  { %1945 = vmatprep.subr.bf16.mxu1 %v2231_v13 }
  0x14   :  { %1946 = vmatpush3.bf16.msra.mxu1 %v2304_v15 }
  0x15   :  { %1959 = vmatprep.subr.bf16.mxu1 %v2231_v13 }
  0xc6   :  { %v1929_v18 = vpop.f32.mrf.mxu0 }
  0xc7   :  { %v1933_v19 = vpop.f32.mrf.mxu1  ;;  %v2331_v20 = vadd.f32 %v1929_v18, %v1747_v17 }
  0xc8   :  { %v2333_v21 = vadd.f32 %v1933_v19, %v1747_v17  ;;  %v99_v22 = vpop.f32.mrf.mxu0 }
  0xc9   :  { %v115_v23 = vpop.f32.mrf.mxu1  ;;  %v100_v30 = vadd.f32 %v1747_v17, %v99_v22 }
  0xca   :  { %v2335_v24 = vadd.f32 %v1747_v17, %v115_v23  ;;  %v1930_v25 = vpop.f32.mrf.mxu0 }
  0xcb   :  { %v1934_v26 = vpop.f32.mrf.mxu1  ;;  %v2337_v27 = vadd.f32 %v1930_v25, %v1747_v17 }
  0xcc   :  { %v2339_v28 = vadd.f32 %v1934_v26, %v1747_v17  ;;  %v102_v59 = vpop.f32.mrf.mxu0 }
  0xcd   :  { %v118_v29 = vpop.f32.mrf.mxu1  ;;  %v103_v60 = vadd.f32 %v1747_v17, %v102_v59 }
  0xce   :  { %v2341_v31 = vadd.f32 %v1747_v17, %v118_v29 }
  0xcf   :  { %v180_v32 = vpop.f32.mrf.mxu1 }
  0xd0   :  { %v186_v33 = vadd.f32 %v180_v32, %v100_v30 }
  0xd1   :  { %v1941_v34 = vpop.f32.mrf.mxu1 }
  0xd2   :  { %v1755_v35 = vmul.f32 -1.442695, %v186_v33 }
  0xd3   :  { %v183_v36 = vpop.f32.mrf.mxu1 }
  0xd4   :  { %2103 = vpow2.f32 %v1755_v35 }
  0xd5   :  { %v1942_v37 = vpop.f32.mrf.mxu1 }
  0xe1   :  { %v2104_v38 = vpop.eup %2103 }
  0xe2   :  { %v190_v39 = vadd.f32 1.0, %v2104_v38 }
  0xe4   :  { %2105 = vrcp.f32 %v190_v39 }
  0xf1   :  { %v2106_v40 = vpop.eup %2105 }
  0xf2   :  { %v193_v41 = vmul.f32 2.0, %v2106_v40  ;;  %v195_v45 = vmul.f32 0.0, %v2106_v40 }
  0xf4   :  { %v1756_v42 = vadd.f32 -1.0, %v193_v41 }
  0xf6   :  { %197 = vrot.lane.b32.xlu0 %v1756_v42, %s2234_s16 }
 0x168   :  { %v198_v43 = vpop.permute.xlu0 %197 }
 0x169   :  { %v200_v44 = vmul.f32 %v2106_v40, %v198_v43 }
 0x16b   :  { %202 = vrot.lane.b32.xlu0 %v200_v44, %s2235_s17 }
 0x1dd   :  { %v203_v46 = vpop.permute.xlu0 %202 }
 0x1de   :  { %v205_v47 = vadd.f32 %v203_v46, %v195_v45 }
 0x1e0   :  { %v1757_v48 = vmul.f32 -2.0, %v205_v47 }
 0x1e2   :  { %v208_v49 = vmul.f32 1.442695, %v1757_v48 }
 0x1e4   :  { %2107 = vpow2.f32 %v208_v49 }
 0x1f1   :  { %v2108_v50 = vpop.eup %2107 }
 0x1f2   :  { %v210_v51 = vadd.f32 1.0, %v2108_v50 }
 0x1f4   :  { %2109 = vrcp.f32 %v210_v51 }
 0x201   :  { %v2110_v52 = vpop.eup %2109 }
 0x202   :  { %v213_v53 = vmul.f32 2.0, %v2110_v52 }
 0x204   :  { %v1758_v54 = vadd.f32 -1.0, %v213_v53 }
 0x206   :  { %216 = vrot.lane.b32.xlu1 %v1758_v54, %s2234_s16 }
 0x278   :  { %v217_v55 = vpop.permute.xlu1 %216 }
 0x279   :  { %v2346_v56 = vmul.f32 %v2106_v40, %v217_v55 }
 0x27b   :  { %v220_v57 = vpack.c.bf16 %v2346_v56, %v2346_v56 }
 0x27d   :  { %222 = vrot.lane.b32.xlu1 %v220_v57, %s2235_s17 }
 0x2ef   :  { %v223_v58 = vpop.permute.xlu1 %222 }
 0x2f0   :  { %1948 = vmatmul.mubr.msk.bf16.vlgmr.msra.gmra.mxu1 %vm142_vm2, %v223_v58 }
 0x2f1   :  { %1960 = vmatpush3.bf16.msra.mxu1 %v2298_v14  ;;  %1963 = vmatprep.mubr.msk.bf16.mxu1 %vm2232_vm1, %v2231_v13 }
 0x2f2   :  { %1961 = vmatprep.subr.bf16.mxu1 %v2231_v13 }
 0x2f5   :  { %1962 = vmatpush3.bf16.msra.mxu1 %v2304_v15 }
 0x2f6   :  { %1975 = vmatprep.subr.bf16.mxu1 %v2231_v13 }
 0x3b0   :  { %v261_v61 = vpop.f32.mrf.mxu1 }
 0x3b1   :  { %v267_v62 = vadd.f32 %v261_v61, %v103_v60 }
 0x3b2   :  { %v1949_v63 = vpop.f32.mrf.mxu1 }
 0x3b3   :  { %v1760_v0 = vmul.f32 -1.442695, %v267_v62 }
 0x3b4   :  { %v264_v1 = vpop.f32.mrf.mxu1 }
 0x3b5   :  { %2111 = vpow2.f32 %v1760_v0 }
 0x3b6   :  { %v1950_v2 = vpop.f32.mrf.mxu1 }
 0x3c2   :  { %v2112_v3 = vpop.eup %2111 }
 0x3c3   :  { %v271_v4 = vadd.f32 1.0, %v2112_v3 }
 0x3c5   :  { %2113 = vrcp.f32 %v271_v4 }
 0x3d2   :  { %v2114_v5 = vpop.eup %2113 }
 0x3d3   :  { %v274_v6 = vmul.f32 2.0, %v2114_v5  ;;  %v276_v10 = vmul.f32 %v2114_v5, %v205_v47 }
 0x3d5   :  { %v1761_v7 = vadd.f32 -1.0, %v274_v6 }
 0x3d7   :  { %278 = vrot.lane.b32.xlu0 %v1761_v7, %s2234_s16 }
 0x449   :  { %v279_v8 = vpop.permute.xlu0 %278 }
 0x44a   :  { %v281_v9 = vmul.f32 %v2114_v5, %v279_v8 }
 0x44c   :  { %283 = vrot.lane.b32.xlu1 %v281_v9, %s2235_s17 }
 0x4be   :  { %v284_v11 = vpop.permute.xlu1 %283 }
 0x4bf   :  { %v286_v12 = vadd.f32 %v284_v11, %v276_v10 }
 0x4c1   :  { %v1762_v17 = vmul.f32 -2.0, %v286_v12 }
 0x4c3   :  { %v289_v18 = vmul.f32 1.442695, %v1762_v17 }
 0x4c5   :  { %2115 = vpow2.f32 %v289_v18 }
 0x4d2   :  { %v2116_v19 = vpop.eup %2115 }
 0x4d3   :  { %v291_v22 = vadd.f32 1.0, %v2116_v19 }
 0x4d5   :  { %2117 = vrcp.f32 %v291_v22 }
 0x4e2   :  { %v2118_v23 = vpop.eup %2117 }
 0x4e3   :  { %v294_v25 = vmul.f32 2.0, %v2118_v23 }
 0x4e5   :  { %v1763_v26 = vadd.f32 -1.0, %v294_v25 }
 0x4e7   :  { %297 = vrot.lane.b32.xlu0 %v1763_v26, %s2234_s16 }
 0x559   :  { %v298_v29 = vpop.permute.xlu0 %297 }
 0x55a   :  { %v2361_v30 = vmul.f32 %v2114_v5, %v298_v29 }
 0x55c   :  { %v301_v32 = vpack.c.bf16 %v2361_v30, %v2361_v30 }
 0x55e   :  { %303 = vrot.lane.b32.xlu1 %v301_v32, %s2235_s17 }
 0x5d0   :  { %v304_v33 = vpop.permute.xlu1 %303 }
 0x5d1   :  { %1956 = vmatmul.mubr.msk.bf16.vlgmr.msra.gmra.mxu0 %vm142_vm2, %v304_v33 }
 0x5d2   :  { %1968 = vmatpush3.bf16.msra.mxu0 %v2298_v14  ;;  %1971 = vmatprep.mubr.msk.bf16.mxu0 %vm2232_vm1, %v2231_v13 }
 0x5d3   :  { %1969 = vmatprep.subr.bf16.mxu0 %v2231_v13 }
 0x5d6   :  { %1970 = vmatpush3.bf16.msra.mxu0 %v2304_v15 }
 0x5d7   :  { %1983 = vmatprep.subr.bf16.mxu0 %v2231_v13 }
 0x691   :  { %v342_v34 = vpop.f32.mrf.mxu0 }
 0x692   :  { %v348_v35 = vadd.f32 %v342_v34, %v2331_v20 }
 0x693   :  { %v1957_v36 = vpop.f32.mrf.mxu0 }
 0x694   :  { %v1765_v37 = vmul.f32 -1.442695, %v348_v35 }
 0x695   :  { %v345_v38 = vpop.f32.mrf.mxu0 }
 0x696   :  { %2119 = vpow2.f32 %v1765_v37 }
 0x697   :  { %v1958_v39 = vpop.f32.mrf.mxu0 }
 0x6a3   :  { %v2120_v40 = vpop.eup %2119 }
 0x6a4   :  { %v352_v41 = vadd.f32 1.0, %v2120_v40 }
 0x6a6   :  { %2121 = vrcp.f32 %v352_v41 }
 0x6b3   :  { %v2122_v42 = vpop.eup %2121 }
 0x6b4   :  { %v355_v43 = vmul.f32 2.0, %v2122_v42  ;;  %v357_v47 = vmul.f32 %v2122_v42, %v286_v12 }
 0x6b6   :  { %v1766_v44 = vadd.f32 -1.0, %v355_v43 }
 0x6b8   :  { %359 = vrot.lane.b32.xlu0 %v1766_v44, %s2234_s16 }
 0x72a   :  { %v360_v45 = vpop.permute.xlu0 %359 }
 0x72b   :  { %v362_v46 = vmul.f32 %v2122_v42, %v360_v45 }
 0x72d   :  { %364 = vrot.lane.b32.xlu1 %v362_v46, %s2235_s17 }
 0x79f   :  { %v365_v48 = vpop.permute.xlu1 %364 }
 0x7a0   :  { %v367_v20 = vadd.f32 %v365_v48, %v357_v47 }
 0x7a2   :  { %v1767_v49 = vmul.f32 -2.0, %v367_v20 }
 0x7a4   :  { %v370_v50 = vmul.f32 1.442695, %v1767_v49 }
 0x7a6   :  { %2123 = vpow2.f32 %v370_v50 }
 0x7b3   :  { %v2124_v51 = vpop.eup %2123 }
 0x7b4   :  { %v372_v52 = vadd.f32 1.0, %v2124_v51 }
 0x7b6   :  { %2125 = vrcp.f32 %v372_v52 }
 0x7c3   :  { %v2126_v53 = vpop.eup %2125 }
 0x7c4   :  { %v375_v54 = vmul.f32 2.0, %v2126_v53 }
 0x7c6   :  { %v1768_v55 = vadd.f32 -1.0, %v375_v54 }
 0x7c8   :  { %378 = vrot.lane.b32.xlu0 %v1768_v55, %s2234_s16 }
 0x83a   :  { %v379_v57 = vpop.permute.xlu0 %378 }
 0x83b   :  { %v2377_v58 = vmul.f32 %v2122_v42, %v379_v57 }
 0x83d   :  { %v382_v59 = vpack.c.bf16 %v2377_v58, %v2377_v58 }
 0x83f   :  { %384 = vrot.lane.b32.xlu1 %v382_v59, %s2235_s17 }
 0x8b1   :  { %v385_v60 = vpop.permute.xlu1 %384 }
 0x8b2   :  { %1964 = vmatmul.mubr.msk.bf16.vlgmr.msra.gmra.mxu1 %vm142_vm2, %v385_v60 }
 0x8b3   :  { %1976 = vmatpush3.bf16.msra.mxu1 %v2298_v14  ;;  %1979 = vmatprep.mubr.msk.bf16.mxu1 %vm2232_vm1, %v2231_v13 }
 0x8b4   :  { %1977 = vmatprep.subr.bf16.mxu1 %v2231_v13 }
 0x8b7   :  { %1978 = vmatpush3.bf16.msra.mxu1 %v2304_v15 }
 0x8b8   :  { %1991 = vmatprep.subr.bf16.mxu1 %v2231_v13 }
 0x972   :  { %v423_v61 = vpop.f32.mrf.mxu1 }
 0x973   :  { %v429_v62 = vadd.f32 %v423_v61, %v2337_v27 }
 0x974   :  { %v1965_v63 = vpop.f32.mrf.mxu1 }
 0x975   :  { %v1770_v0 = vmul.f32 -1.442695, %v429_v62 }
 0x976   :  { %v426_v1 = vpop.f32.mrf.mxu1 }
 0x977   :  { %2127 = vpow2.f32 %v1770_v0 }
 0x978   :  { %v1966_v2 = vpop.f32.mrf.mxu1 }
 0x984   :  { %v2128_v3 = vpop.eup %2127 }
 0x985   :  { %v433_v4 = vadd.f32 1.0, %v2128_v3 }
 0x987   :  { %2129 = vrcp.f32 %v433_v4 }
 0x994   :  { %v2130_v5 = vpop.eup %2129 }
 0x995   :  { %v436_v6 = vmul.f32 2.0, %v2130_v5  ;;  %v438_v10 = vmul.f32 %v2130_v5, %v367_v20 }
 0x997   :  { %v1771_v7 = vadd.f32 -1.0, %v436_v6 }
 0x999   :  { %440 = vrot.lane.b32.xlu0 %v1771_v7, %s2234_s16 }
 0xa0b   :  { %v441_v8 = vpop.permute.xlu0 %440 }
 0xa0c   :  { %v443_v9 = vmul.f32 %v2130_v5, %v441_v8 }
 0xa0e   :  { %445 = vrot.lane.b32.xlu1 %v443_v9, %s2235_s17 }
 0xa80   :  { %v446_v11 = vpop.permute.xlu1 %445 }
 0xa81   :  { %v448_v27 = vadd.f32 %v446_v11, %v438_v10 }
 0xa83   :  { %v1772_v12 = vmul.f32 -2.0, %v448_v27 }
 0xa85   :  { %v451_v17 = vmul.f32 1.442695, %v1772_v12 }
 0xa87   :  { %2131 = vpow2.f32 %v451_v17 }
 0xa94   :  { %v2132_v18 = vpop.eup %2131 }
 0xa95   :  { %v453_v19 = vadd.f32 1.0, %v2132_v18 }
 0xa97   :  { %2133 = vrcp.f32 %v453_v19 }
 0xaa4   :  { %v2134_v22 = vpop.eup %2133 }
 0xaa5   :  { %v456_v23 = vmul.f32 2.0, %v2134_v22 }
 0xaa7   :  { %v1773_v25 = vadd.f32 -1.0, %v456_v23 }
 0xaa9   :  { %459 = vrot.lane.b32.xlu0 %v1773_v25, %s2234_s16 }
 0xb1b   :  { %v460_v26 = vpop.permute.xlu0 %459 }
 0xb1c   :  { %v2393_v29 = vmul.f32 %v2130_v5, %v460_v26 }
 0xb1e   :  { %v463_v32 = vpack.c.bf16 %v2393_v29, %v2393_v29 }
 0xb20   :  { %465 = vrot.lane.b32.xlu1 %v463_v32, %s2235_s17 }
 0xb92   :  { %v466_v33 = vpop.permute.xlu1 %465 }
 0xb93   :  { %1972 = vmatmul.mubr.msk.bf16.vlgmr.msra.gmra.mxu0 %vm142_vm2, %v466_v33 }
 0xb94   :  { %1984 = vmatpush3.bf16.msra.mxu0 %v2298_v14  ;;  %1987 = vmatprep.mubr.msk.bf16.mxu0 %vm2232_vm1, %v2231_v13 }
 0xb95   :  { %1985 = vmatprep.subr.bf16.mxu0 %v2231_v13 }
 0xb98   :  { %1986 = vmatpush3.bf16.msra.mxu0 %v2304_v15 }
 0xc53   :  { %v504_v34 = vpop.f32.mrf.mxu0 }
 0xc54   :  { %v510_v35 = vadd.f32 %v504_v34, %v2335_v24 }
 0xc55   :  { %v1973_v36 = vpop.f32.mrf.mxu0 }
 0xc56   :  { %v1775_v37 = vmul.f32 -1.442695, %v510_v35 }
 0xc57   :  { %v507_v38 = vpop.f32.mrf.mxu0 }
 0xc58   :  { %2135 = vpow2.f32 %v1775_v37 }
 0xc59   :  { %v1974_v39 = vpop.f32.mrf.mxu0 }
 0xc65   :  { %v2136_v40 = vpop.eup %2135 }
 0xc66   :  { %v514_v41 = vadd.f32 1.0, %v2136_v40 }
 0xc68   :  { %2137 = vrcp.f32 %v514_v41 }
 0xc75   :  { %v2138_v42 = vpop.eup %2137 }
 0xc76   :  { %v517_v43 = vmul.f32 2.0, %v2138_v42  ;;  %v519_v47 = vmul.f32 %v2138_v42, %v448_v27 }
 0xc78   :  { %v1776_v44 = vadd.f32 -1.0, %v517_v43 }
 0xc7a   :  { %521 = vrot.lane.b32.xlu0 %v1776_v44, %s2234_s16 }
 0xcec   :  { %v522_v45 = vpop.permute.xlu0 %521 }
 0xced   :  { %v524_v46 = vmul.f32 %v2138_v42, %v522_v45 }
 0xcef   :  { %526 = vrot.lane.b32.xlu1 %v524_v46, %s2235_s17 }
 0xd61   :  { %v527_v48 = vpop.permute.xlu1 %526 }
 0xd62   :  { %v529_v24 = vadd.f32 %v527_v48, %v519_v47 }
 0xd64   :  { %v1777_v20 = vmul.f32 -2.0, %v529_v24 }
 0xd66   :  { %v532_v49 = vmul.f32 1.442695, %v1777_v20 }
 0xd68   :  { %2139 = vpow2.f32 %v532_v49 }
 0xd75   :  { %v2140_v50 = vpop.eup %2139 }
 0xd76   :  { %v534_v51 = vadd.f32 1.0, %v2140_v50  ;;  %v2097_v50 = vld [vmem:[%s2699_s1 + $0x28] sm:$0xff]  }
 0xd77   :  { %1999 = vmatprep.subr.bf16.mxu0 %v2097_v50 }
 0xd78   :  { %2141 = vrcp.f32 %v534_v51 }
 0xd85   :  { %v2142_v52 = vpop.eup %2141 }
 0xd86   :  { %v537_v53 = vmul.f32 2.0, %v2142_v52 }
 0xd88   :  { %v1778_v54 = vadd.f32 -1.0, %v537_v53  ;;  %v798_v53 = vpack.c.bf16 %v2361_v30, %v2346_v56  ;;  %v799_v56 = vpack.c.bf16 %v2393_v29, %v2377_v58  ;;  %v2459_v30 = vld [vmem:[%s2699_s1 + $0x38] sm:$0xff]  }
 0xd8a   :  { %540 = vrot.lane.b32.xlu0 %v1778_v54, %s2234_s16  ;;  %v2098_v54 = vld [vmem:[%s2699_s1 + $0x20] sm:$0xff]  }
 0xdfc   :  { %v541_v55 = vpop.permute.xlu0 %540 }
 0xdfd   :  { %v2408_v57 = vmul.f32 %v2138_v42, %v541_v55 }
 0xdff   :  { %v544_v59 = vpack.c.bf16 %v2408_v57, %v2408_v57 }
 0xe01   :  { %546 = vrot.lane.b32.xlu1 %v544_v59, %s2235_s17 }
 0xe73   :  { %v547_v60 = vpop.permute.xlu1 %546 }
 0xe74   :  { %1980 = vmatmul.mubr.msk.bf16.vlgmr.msra.gmra.mxu1 %vm142_vm2, %v547_v60 }
 0xe75   :  { %1992 = vmatpush3.bf16.msra.mxu1 %v2298_v14  ;;  %1995 = vmatprep.mubr.msk.bf16.mxu1 %vm2232_vm1, %v2231_v13 }
 0xe76   :  { %1993 = vmatprep.subr.bf16.mxu1 %v2231_v13 }
 0xe79   :  { %1994 = vmatpush3.bf16.msra.mxu1 %v2304_v15 }
 0xe7a   :  { %2011 = vmatprep.subr.bf16.mxu1 %v2231_v13 }
 0xf34   :  { %v585_v61 = vpop.f32.mrf.mxu1 }
 0xf35   :  { %v591_v62 = vadd.f32 %v585_v61, %v2341_v31 }
 0xf36   :  { %v1981_v63 = vpop.f32.mrf.mxu1 }
 0xf37   :  { %v1780_v0 = vmul.f32 -1.442695, %v591_v62  ;;  %v2466_v63 = vld [vmem:[%s2699_s1 + $0x30] sm:$0xff]  }
 0xf38   :  { %v588_v1 = vpop.f32.mrf.mxu1 }
 0xf39   :  { %2143 = vpow2.f32 %v1780_v0 }
 0xf3a   :  { %v1982_v2 = vpop.f32.mrf.mxu1 }
 0xf46   :  { %v2144_v3 = vpop.eup %2143 }
 0xf47   :  { %v595_v4 = vadd.f32 1.0, %v2144_v3  ;;  %v2491_v3 = vld [vmem:[%s2701_s2 + $0x1] ss:$0 sm:$0xff] }
 0xf49   :  { %2145 = vrcp.f32 %v595_v4 }
 0xf56   :  { %v2146_v14 = vpop.eup %2145 }
 0xf57   :  { %v598_v5 = vmul.f32 2.0, %v2146_v14  ;;  %v600_v8 = vmul.f32 %v2146_v14, %v529_v24 }
 0xf59   :  { %v1781_v6 = vadd.f32 -1.0, %v598_v5 }
 0xf5b   :  { %602 = vrot.lane.b32.xlu0 %v1781_v6, %s2234_s16 }
 0xfcd   :  { %v603_v7 = vpop.permute.xlu0 %602 }
 0xfce   :  { %v605_v15 = vmul.f32 %v2146_v14, %v603_v7 }
 0xfd0   :  { %607 = vrot.lane.b32.xlu1 %v605_v15, %s2235_s17 }
0x1042   :  { %v608_v9 = vpop.permute.xlu1 %607 }
0x1043   :  { %v610_v31 = vadd.f32 %v608_v9, %v600_v8 }
0x1045   :  { %v1782_v10 = vmul.f32 -2.0, %v610_v31 }
0x1047   :  { %v613_v11 = vmul.f32 1.442695, %v1782_v10 }
0x1049   :  { %2147 = vpow2.f32 %v613_v11 }
0x1056   :  { %v2148_v27 = vpop.eup %2147 }
0x1057   :  { %v615_v12 = vadd.f32 1.0, %v2148_v27 }
0x1059   :  { %2149 = vrcp.f32 %v615_v12 }
0x1066   :  { %v2150_v17 = vpop.eup %2149 }
0x1067   :  { %v618_v18 = vmul.f32 2.0, %v2150_v17 }
0x1069   :  { %v1783_v19 = vadd.f32 -1.0, %v618_v18 }
0x106b   :  { %621 = vrot.lane.b32.xlu0 %v1783_v19, %s2234_s16 }
0x10dd   :  { %v622_v22 = vpop.permute.xlu0 %621 }
0x10de   :  { %v2424_v23 = vmul.f32 %v2146_v14, %v622_v22 }
0x10e0   :  { %v625_v25 = vpack.c.bf16 %v2424_v23, %v2424_v23 }
0x10e2   :  { %627 = vrot.lane.b32.xlu1 %v625_v25, %s2235_s17 }
0x1154   :  { %v628_v26 = vpop.permute.xlu1 %627 }
0x1155   :  { %1988 = vmatmul.mubr.msk.bf16.vlgmr.msra.gmra.mxu0 %vm142_vm2, %v628_v26 }
0x1156   :  { %2000 = vmatpush3.bf16.msra.mxu0 %v2097_v50 }
0x1157   :  { %2001 = vmatprep.subr.bf16.mxu0 %v2098_v54 }
0x115a   :  { %2002 = vmatpush3.bf16.msra.mxu0 %v2098_v54 }
0x115b   :  { %2027 = vmatprep.subr.bf16.mxu0 %v2231_v13 }
0x1215   :  { %v666_v32 = vpop.f32.mrf.mxu0 }
0x1216   :  { %v672_v33 = vadd.f32 %v666_v32, %v2333_v21 }
0x1217   :  { %v1989_v34 = vpop.f32.mrf.mxu0 }
0x1218   :  { %v1785_v35 = vmul.f32 -1.442695, %v672_v33 }
0x1219   :  { %v669_v36 = vpop.f32.mrf.mxu0 }
0x121a   :  { %2151 = vpow2.f32 %v1785_v35 }
0x121b   :  { %v1990_v37 = vpop.f32.mrf.mxu0 }
0x1227   :  { %v2152_v38 = vpop.eup %2151 }
0x1228   :  { %v676_v39 = vadd.f32 1.0, %v2152_v38 }
0x122a   :  { %2153 = vrcp.f32 %v676_v39 }
0x1237   :  { %v2154_v40 = vpop.eup %2153 }
0x1238   :  { %v679_v41 = vmul.f32 2.0, %v2154_v40  ;;  %v681_v45 = vmul.f32 %v2154_v40, %v610_v31 }
0x123a   :  { %v1786_v42 = vadd.f32 -1.0, %v679_v41 }
0x123c   :  { %683 = vrot.lane.b32.xlu0 %v1786_v42, %s2234_s16 }
0x12ae   :  { %v684_v43 = vpop.permute.xlu0 %683 }
0x12af   :  { %v686_v44 = vmul.f32 %v2154_v40, %v684_v43 }
0x12b1   :  { %688 = vrot.lane.b32.xlu1 %v686_v44, %s2235_s17 }
0x1323   :  { %v689_v46 = vpop.permute.xlu1 %688 }
0x1324   :  { %v2433_v21 = vadd.f32 %v689_v46, %v681_v45 }
0x1326   :  { %v1787_v47 = vmul.f32 -2.0, %v2433_v21 }
0x1328   :  { %v694_v48 = vmul.f32 1.442695, %v1787_v47 }
0x132a   :  { %2155 = vpow2.f32 %v694_v48 }
0x1337   :  { %v2156_v24 = vpop.eup %2155 }
0x1338   :  { %v696_v20 = vadd.f32 1.0, %v2156_v24 }
0x133a   :  { %2157 = vrcp.f32 %v696_v20 }
0x1347   :  { %v2158_v49 = vpop.eup %2157 }
0x1348   :  { %v699_v51 = vmul.f32 2.0, %v2158_v49 }
0x134a   :  { %v1788_v52 = vadd.f32 -1.0, %v699_v51 }
0x134c   :  { %702 = vrot.lane.b32.xlu0 %v1788_v52, %s2234_s16 }
0x1350   :  { %812 = vrot.lane.b32.xlu0 %v798_v53, %s2235_s17 }
0x13be   :  { %v703_v55 = vpop.permute.xlu0 %702 }
0x13bf   :  { %v2447_v59 = vmul.f32 %v2154_v40, %v703_v55 }
0x13c1   :  { %v706_v60 = vpack.c.bf16 %v2447_v59, %v2447_v59 }
0x13c2   :  { %v813_v61 = vpop.permute.xlu0 %812 }
0x13c3   :  { %708 = vrot.lane.b32.xlu1 %v706_v60, %s2235_s17  ;;  %2003 = vmatprep.mubr.msk.bf16.mxu0 %vm142_vm2, %v813_v61  ;;  %v800_v61 = vpack.c.bf16 %v2424_v23, %v2408_v57 }
0x13c7   :  { %814 = vrot.lane.b32.xlu1 %v799_v56, %s2235_s17 }
0x1435   :  { %v709_v62 = vpop.permute.xlu1 %708 }
0x1436   :  { %1996 = vmatmul.mubr.msk.bf16.vlgmr.msra.gmra.mxu1 %vm142_vm2, %v709_v62 }
0x1437   :  { %2012 = vmatpush3.bf16.msra.mxu1 %v2459_v30  ;;  %2015 = vmatprep.mubr.msk.bf16.mxu1 %vm2232_vm1, %v2231_v13 }
0x1438   :  { %2013 = vmatprep.subr.bf16.mxu1 %v2231_v13 }
0x1439   :  { %v815_v58 = vpop.permute.xlu1 %814 }
0x143a   :  { %2004 = vmatmul.mubr.msk.bf16.vlgmr.msra.gmra.mxu0 %vm142_vm2, %v815_v58 }
0x143b   :  { %2014 = vmatpush3.bf16.msra.mxu1 %v2466_v63  ;;  %2028 = vmatpush3.bf16.msra.mxu0 %v2459_v30 }
0x143c   :  { %2019 = vmatprep.subr.bf16.mxu1 %v2231_v13  ;;  %2029 = vmatprep.subr.bf16.mxu0 %v2231_v13 }
0x143e   :  { %2016 = vmatmul.mubr.bf16.vlgmr.msra.gmra.mxu1 %v2233_v16 }
0x143f   :  { %2020 = vmatpush3.bf16.msra.mxu1 %v2459_v30  ;;  %2023 = vmatprep.mubr.msk.bf16.mxu1 %vm2232_vm1, %v2231_v13 }
0x1440   :  { %2021 = vmatprep.subr.bf16.mxu1 %v2231_v13  ;;  %2030 = vmatpush3.bf16.msra.mxu0 %v2466_v63 }
0x1441   :  { %2043 = vmatprep.subr.bf16.mxu0 %v2231_v13 }
0x1443   :  { %2022 = vmatpush3.bf16.msra.mxu1 %v2466_v63 }
0x1444   :  { %2035 = vmatprep.subr.bf16.mxu1 %v2231_v13 }
0x14f6   :  { %v747_v29 = vpop.f32.mrf.mxu1 }
0x14f7   :  { %v753_v0 = vadd.f32 %v747_v29, %v2339_v28 }
0x14f8   :  { %v1997_v1 = vpop.f32.mrf.mxu1 }
0x14f9   :  { %v1790_v19 = vmul.f32 -1.442695, %v753_v0 }
0x14fa   :  { %v750_v16 = vpop.f32.mrf.mxu1  ;;  %v2486_v2 = vpop.f32.mrf.mxu0 }
0x14fc   :  { %v1998_v4 = vpop.f32.mrf.mxu1  ;;  %v878_v14 = vpop.f32.mrf.mxu0 }
0x14fd   :  { %v879_v5 = vadd.f32 %v2491_v3, %v878_v14 }
0x14fe   :  { %v955_v6 = vpop.f32.mrf.mxu1  ;;  %v2525_v58 = vpop.f32.mrf.mxu0 }
0x14ff   :  { %v961_v7 = vadd.f32 %v955_v6, %v879_v5 }
0x1500   :  { %v2017_v15 = vpop.f32.mrf.mxu1  ;;  %v881_v29 = vpop.f32.mrf.mxu0 }
0x1501   :  { %v1812_v8 = vmul.f32 -1.442695, %v961_v7  ;;  %v882_v0 = vadd.f32 %v2491_v3, %v881_v29 }
0x1502   :  { %v958_v9 = vpop.f32.mrf.mxu1 }
0x1503   :  { %2159 = vpow2.f32 %v1812_v8 }
0x1504   :  { %v2018_v28 = vpop.f32.mrf.mxu1 }
0x1510   :  { %v2160_v31 = vpop.eup %2159 }
0x1511   :  { %v965_v10 = vadd.f32 1.0, %v2160_v31 }
0x1513   :  { %2161 = vrcp.f32 %v965_v10 }
0x1514   :  { %2163 = vpow2.f32 %v1790_v19 }
0x1520   :  { %v2162_v11 = vpop.eup %2161 }
0x1521   :  { %v968_v27 = vmul.f32 2.0, %v2162_v11  ;;  %v970_v22 = vmul.f32 0.0, %v2162_v11  ;;  %v2164_v34 = vpop.eup %2163 }
0x1522   :  { %v757_v35 = vadd.f32 1.0, %v2164_v34 }
0x1523   :  { %v1813_v12 = vadd.f32 -1.0, %v968_v27 }
0x1525   :  { %972 = vrot.lane.b32.xlu0 %v1813_v12, %s2234_s16 }
0x1597   :  { %v973_v17 = vpop.permute.xlu0 %972 }
0x1598   :  { %v975_v18 = vmul.f32 %v2162_v11, %v973_v17 }
0x159a   :  { %977 = vrot.lane.b32.xlu1 %v975_v18, %s2235_s17 }
0x160c   :  { %v978_v25 = vpop.permute.xlu1 %977 }
0x160d   :  { %v2496_v26 = vadd.f32 %v978_v25, %v970_v22 }
0x160f   :  { %v1814_v32 = vmul.f32 -2.0, %v2496_v26 }
0x1611   :  { %v983_v33 = vmul.f32 1.442695, %v1814_v32 }
0x1613   :  { %2165 = vpow2.f32 %v983_v33 }
0x1614   :  { %2167 = vrcp.f32 %v757_v35 }
0x1620   :  { %v2166_v36 = vpop.eup %2165 }
0x1621   :  { %v985_v37 = vadd.f32 1.0, %v2166_v36  ;;  %v2499_v38 = vpop.eup %2167 }
0x1622   :  { %v760_v42 = vmul.f32 2.0, %v2499_v38  ;;  %v762_v20 = vmul.f32 %v2499_v38, %v2433_v21 }
0x1623   :  { %2169 = vrcp.f32 %v985_v37 }
0x1624   :  { %v1791_v43 = vadd.f32 -1.0, %v760_v42 }
0x1630   :  { %v2170_v39 = vpop.eup %2169 }
0x1631   :  { %v988_v40 = vmul.f32 2.0, %v2170_v39 }
0x1633   :  { %v1815_v41 = vadd.f32 -1.0, %v988_v40 }
0x1635   :  { %991 = vrot.lane.b32.xlu0 %v1815_v41, %s2234_s16  ;;  %v887_v41 = vadd.f32 %v2486_v2, %v2491_v3 }
0x1639   :  { %764 = vrot.lane.b32.xlu0 %v1791_v43, %s2234_s16 }
0x16a7   :  { %v992_v44 = vpop.permute.xlu0 %991 }
0x16a8   :  { %v2504_v45 = vmul.f32 %v2162_v11, %v992_v44 }
0x16aa   :  { %v995_v46 = vpack.c.bf16 %v2504_v45, %v2504_v45 }
0x16ab   :  { %v765_v47 = vpop.permute.xlu0 %764 }
0x16ac   :  { %v767_v48 = vmul.f32 %v2499_v38, %v765_v47  ;;  %997 = vrot.lane.b32.xlu1 %v995_v46, %s2235_s17 }
0x16ae   :  { %769 = vrot.lane.b32.xlu0 %v767_v48, %s2235_s17 }
0x171e   :  { %v998_v24 = vpop.permute.xlu1 %997 }
0x171f   :  { %2024 = vmatmul.mubr.msk.bf16.vlgmr.msra.gmra.mxu1 %vm142_vm2, %v998_v24 }
0x1720   :  { %v770_v49 = vpop.permute.xlu0 %769  ;;  %2036 = vmatpush3.bf16.msra.mxu1 %v2459_v30  ;;  %2039 = vmatprep.mubr.msk.bf16.mxu1 %vm2232_vm1, %v2231_v13 }
0x1721   :  { %v772_v50 = vadd.f32 %v770_v49, %v762_v20  ;;  %2037 = vmatprep.subr.bf16.mxu1 %v2231_v13 }
0x1723   :  { %v1792_v51 = vmul.f32 -2.0, %v772_v50 }
0x1724   :  { %2038 = vmatpush3.bf16.msra.mxu1 %v2466_v63 }
0x1725   :  { %v775_v52 = vmul.f32 1.442695, %v1792_v51  ;;  %2051 = vmatprep.subr.bf16.mxu1 %v2231_v13 }
0x1727   :  { %2171 = vpow2.f32 %v775_v52 }
0x1734   :  { %v2172_v53 = vpop.eup %2171 }
0x1735   :  { %v777_v54 = vadd.f32 1.0, %v2172_v53 }
0x1737   :  { %2173 = vrcp.f32 %v777_v54 }
0x1744   :  { %v2174_v21 = vpop.eup %2173 }
0x1745   :  { %v780_v55 = vmul.f32 2.0, %v2174_v21 }
0x1747   :  { %v1793_v60 = vadd.f32 -1.0, %v780_v55 }
0x1749   :  { %783 = vrot.lane.b32.xlu0 %v1793_v60, %s2234_s16 }
0x174d   :  { %816 = vrot.lane.b32.xlu0 %v800_v61, %s2235_s17 }
0x17bb   :  { %v784_v56 = vpop.permute.xlu0 %783 }
0x17bc   :  { %v786_v25 = vmul.f32 %v2499_v38, %v784_v56 }
0x17be   :  { %v801_v33 = vpack.c.bf16 %v786_v25, %v2447_v59 }
0x17bf   :  { %v817_v62 = vpop.permute.xlu0 %816 }
0x17c0   :  { %2007 = vmatprep.mubr.msk.bf16.mxu0 %vm142_vm2, %v817_v62 }
0x17df   :  { %v1036_v1 = vpop.f32.mrf.mxu1 }
0x17e0   :  { %v1042_v16 = vadd.f32 %v1036_v1, %v882_v0 }
0x17e1   :  { %v2025_v4 = vpop.f32.mrf.mxu1 }
0x17e2   :  { %v1817_v14 = vmul.f32 -1.442695, %v1042_v16 }
0x17e3   :  { %v1039_v5 = vpop.f32.mrf.mxu1 }
0x17e4   :  { %2175 = vpow2.f32 %v1817_v14  ;;  %v890_v5 = vadd.f32 %v2525_v58, %v2491_v3 }
0x17e5   :  { %v2026_v6 = vpop.f32.mrf.mxu1 }
0x17f1   :  { %v2176_v7 = vpop.eup %2175 }
0x17f2   :  { %v1046_v57 = vadd.f32 1.0, %v2176_v7 }
0x17f4   :  { %2177 = vrcp.f32 %v1046_v57 }
0x1801   :  { %v2178_v23 = vpop.eup %2177 }
0x1802   :  { %v1049_v15 = vmul.f32 2.0, %v2178_v23  ;;  %v1051_v31 = vmul.f32 %v2178_v23, %v2496_v26 }
0x1804   :  { %v1818_v8 = vadd.f32 -1.0, %v1049_v15 }
0x1806   :  { %1053 = vrot.lane.b32.xlu1 %v1818_v8, %s2234_s16 }
0x1878   :  { %v1054_v9 = vpop.permute.xlu1 %1053 }
0x1879   :  { %v1056_v28 = vmul.f32 %v2178_v23, %v1054_v9 }
0x187b   :  { %1058 = vrot.lane.b32.xlu1 %v1056_v28, %s2235_s17 }
0x18ed   :  { %v1059_v10 = vpop.permute.xlu1 %1058 }
0x18ee   :  { %v1061_v11 = vadd.f32 %v1059_v10, %v1051_v31 }
0x18f0   :  { %v1819_v27 = vmul.f32 -2.0, %v1061_v11 }
0x18f2   :  { %v1064_v12 = vmul.f32 1.442695, %v1819_v27 }
0x18f4   :  { %2179 = vpow2.f32 %v1064_v12 }
0x1901   :  { %v2180_v17 = vpop.eup %2179 }
0x1902   :  { %v1066_v18 = vadd.f32 1.0, %v2180_v17 }
0x1904   :  { %2181 = vrcp.f32 %v1066_v18 }
0x1911   :  { %v2182_v19 = vpop.eup %2181 }
0x1912   :  { %v1069_v22 = vmul.f32 2.0, %v2182_v19 }
0x1914   :  { %v1820_v32 = vadd.f32 -1.0, %v1069_v22 }
0x1916   :  { %1072 = vrot.lane.b32.xlu1 %v1820_v32, %s2234_s16 }
0x191a   :  { %818 = vrot.lane.b32.xlu1 %v801_v33, %s2235_s17 }
0x1988   :  { %v1073_v26 = vpop.permute.xlu1 %1072 }
0x1989   :  { %v2535_v34 = vmul.f32 %v2178_v23, %v1073_v26 }
0x198b   :  { %v1076_v35 = vpack.c.bf16 %v2535_v34, %v2535_v34 }
0x198c   :  { %v819_v36 = vpop.permute.xlu1 %818 }
0x198d   :  { %1078 = vrot.lane.b32.xlu0 %v1076_v35, %s2235_s17  ;;  %2008 = vmatmul.mubr.msk.bf16.gmra.mxu0 %vm142_vm2, %v819_v36 }
0x198e   :  { %2031 = vmatprep.mubr.msk.bf16.mxu0 %vm2232_vm1, %v2231_v13 }
0x19ff   :  { %v1079_v37 = vpop.permute.xlu0 %1078 }
0x1a00   :  { %2032 = vmatmul.mubr.msk.bf16.vlgmr.msra.gmra.mxu0 %vm142_vm2, %v1079_v37 }
0x1a01   :  { %2044 = vmatpush3.bf16.msra.mxu0 %v2459_v30  ;;  %2047 = vmatprep.mubr.msk.bf16.mxu0 %vm2232_vm1, %v2231_v13 }
0x1a02   :  { %2045 = vmatprep.subr.bf16.mxu0 %v2231_v13 }
0x1a05   :  { %2046 = vmatpush3.bf16.msra.mxu0 %v2466_v63 }
0x1a06   :  { %2059 = vmatprep.subr.bf16.mxu0 %v2231_v13 }
0x1a4d   :  { %v2550_v59 = vpop.f32.mrf.mxu0 }
0x1a4f   :  { %v2552_v38 = vpop.f32.mrf.mxu0 }
0x1a51   :  { %v2554_v39 = vpop.f32.mrf.mxu0 }
0x1a53   :  { %v2556_v40 = vpop.f32.mrf.mxu0 }
0x1ac0   :  { %v1117_v42 = vpop.f32.mrf.mxu0 }
0x1ac1   :  { %v1123_v43 = vadd.f32 %v1117_v42, %v887_v41 }
0x1ac2   :  { %v2033_v44 = vpop.f32.mrf.mxu0 }
0x1ac3   :  { %v1822_v46 = vmul.f32 -1.442695, %v1123_v43  ;;  %v895_v43 = vadd.f32 %v2491_v3, %v2552_v38 }
0x1ac4   :  { %v1120_v47 = vpop.f32.mrf.mxu0 }
0x1ac5   :  { %2183 = vpow2.f32 %v1822_v46 }
0x1ac6   :  { %v2034_v48 = vpop.f32.mrf.mxu0 }
0x1ad2   :  { %v2184_v24 = vpop.eup %2183 }
0x1ad3   :  { %v1127_v20 = vadd.f32 1.0, %v2184_v24 }
0x1ad5   :  { %2185 = vrcp.f32 %v1127_v20 }
0x1ae2   :  { %v2186_v49 = vpop.eup %2185 }
0x1ae3   :  { %v1130_v50 = vmul.f32 2.0, %v2186_v49  ;;  %v1132_v2 = vmul.f32 %v2186_v49, %v1061_v11 }
0x1ae5   :  { %v1823_v51 = vadd.f32 -1.0, %v1130_v50 }
0x1ae7   :  { %1134 = vrot.lane.b32.xlu1 %v1823_v51, %s2234_s16 }
0x1b59   :  { %v1135_v52 = vpop.permute.xlu1 %1134 }
0x1b5a   :  { %v1137_v53 = vmul.f32 %v2186_v49, %v1135_v52 }
0x1b5c   :  { %1139 = vrot.lane.b32.xlu0 %v1137_v53, %s2235_s17 }
0x1bce   :  { %v1140_v54 = vpop.permute.xlu0 %1139 }
0x1bcf   :  { %v1142_v21 = vadd.f32 %v1140_v54, %v1132_v2 }
0x1bd1   :  { %v1824_v55 = vmul.f32 -2.0, %v1142_v21 }
0x1bd3   :  { %v1145_v60 = vmul.f32 1.442695, %v1824_v55 }
0x1bd5   :  { %2187 = vpow2.f32 %v1145_v60 }
0x1be2   :  { %v2188_v61 = vpop.eup %2187 }
0x1be3   :  { %v1147_v56 = vadd.f32 1.0, %v2188_v61 }
0x1be5   :  { %2189 = vrcp.f32 %v1147_v56 }
0x1bf2   :  { %v2190_v62 = vpop.eup %2189 }
0x1bf3   :  { %v1150_v29 = vmul.f32 2.0, %v2190_v62 }
0x1bf5   :  { %v1825_v0 = vadd.f32 -1.0, %v1150_v29 }
0x1bf7   :  { %1153 = vrot.lane.b32.xlu1 %v1825_v0, %s2234_s16 }
0x1c69   :  { %v1154_v1 = vpop.permute.xlu1 %1153 }
0x1c6a   :  { %v2563_v16 = vmul.f32 %v2186_v49, %v1154_v1 }
0x1c6c   :  { %v1157_v4 = vpack.c.bf16 %v2563_v16, %v2563_v16 }
0x1c6e   :  { %1159 = vrot.lane.b32.xlu0 %v1157_v4, %s2235_s17 }
0x1ce0   :  { %v1160_v14 = vpop.permute.xlu0 %1159 }
0x1ce1   :  { %2040 = vmatmul.mubr.msk.bf16.vlgmr.msra.gmra.mxu1 %vm142_vm2, %v1160_v14 }
0x1ce2   :  { %2052 = vmatpush3.bf16.msra.mxu1 %v2459_v30  ;;  %2055 = vmatprep.mubr.msk.bf16.mxu1 %vm2232_vm1, %v2231_v13 }
0x1ce3   :  { %2053 = vmatprep.subr.bf16.mxu1 %v2231_v13 }
0x1ce6   :  { %2054 = vmatpush3.bf16.msra.mxu1 %v2466_v63 }
0x1ce7   :  { %2067 = vmatprep.subr.bf16.mxu1 %v2231_v13 }
0x1da1   :  { %v1198_v6 = vpop.f32.mrf.mxu1 }
0x1da2   :  { %v1204_v7 = vadd.f32 %v1198_v6, %v890_v5 }
0x1da3   :  { %v2041_v57 = vpop.f32.mrf.mxu1 }
0x1da4   :  { %v1827_v23 = vmul.f32 -1.442695, %v1204_v7  ;;  %v898_v7 = vadd.f32 %v2491_v3, %v2556_v40 }
0x1da5   :  { %v1201_v15 = vpop.f32.mrf.mxu1 }
0x1da6   :  { %2191 = vpow2.f32 %v1827_v23 }
0x1da7   :  { %v2042_v8 = vpop.f32.mrf.mxu1 }
0x1db3   :  { %v2192_v9 = vpop.eup %2191 }
0x1db4   :  { %v1208_v28 = vadd.f32 1.0, %v2192_v9 }
0x1db6   :  { %2193 = vrcp.f32 %v1208_v28 }
0x1dc3   :  { %v2194_v31 = vpop.eup %2193 }
0x1dc4   :  { %v1211_v10 = vmul.f32 2.0, %v2194_v31  ;;  %v1213_v58 = vmul.f32 %v2194_v31, %v1142_v21 }
0x1dc6   :  { %v1828_v11 = vadd.f32 -1.0, %v1211_v10 }
0x1dc8   :  { %1215 = vrot.lane.b32.xlu1 %v1828_v11, %s2234_s16 }
0x1e3a   :  { %v1216_v27 = vpop.permute.xlu1 %1215 }
0x1e3b   :  { %v1218_v12 = vmul.f32 %v2194_v31, %v1216_v27 }
0x1e3d   :  { %1220 = vrot.lane.b32.xlu0 %v1218_v12, %s2235_s17 }
0x1eaf   :  { %v1221_v17 = vpop.permute.xlu0 %1220 }
0x1eb0   :  { %v1223_v18 = vadd.f32 %v1221_v17, %v1213_v58 }
0x1eb2   :  { %v1829_v19 = vmul.f32 -2.0, %v1223_v18 }
0x1eb4   :  { %v1226_v22 = vmul.f32 1.442695, %v1829_v19 }
0x1eb6   :  { %2195 = vpow2.f32 %v1226_v22 }
0x1ec3   :  { %v2196_v25 = vpop.eup %2195 }
0x1ec4   :  { %v1228_v32 = vadd.f32 1.0, %v2196_v25 }
0x1ec6   :  { %2197 = vrcp.f32 %v1228_v32 }
0x1ed3   :  { %v2198_v33 = vpop.eup %2197 }
0x1ed4   :  { %v1231_v26 = vmul.f32 2.0, %v2198_v33 }
0x1ed6   :  { %v1830_v35 = vadd.f32 -1.0, %v1231_v26 }
0x1ed8   :  { %1234 = vrot.lane.b32.xlu1 %v1830_v35, %s2234_s16 }
0x1f4a   :  { %v1235_v36 = vpop.permute.xlu1 %1234 }
0x1f4b   :  { %v2580_v37 = vmul.f32 %v2194_v31, %v1235_v36 }
0x1f4d   :  { %v1238_v41 = vpack.c.bf16 %v2580_v37, %v2580_v37 }
0x1f4f   :  { %1240 = vrot.lane.b32.xlu0 %v1238_v41, %s2235_s17 }
0x1fc1   :  { %v1241_v42 = vpop.permute.xlu0 %1240 }
0x1fc2   :  { %2048 = vmatmul.mubr.msk.bf16.vlgmr.msra.gmra.mxu0 %vm142_vm2, %v1241_v42  ;;  %v903_v42 = vadd.f32 %v2550_v59, %v2491_v3 }
0x1fc3   :  { %2060 = vmatpush3.bf16.msra.mxu0 %v2459_v30  ;;  %2063 = vmatprep.mubr.msk.bf16.mxu0 %vm2232_vm1, %v2231_v13 }
0x1fc4   :  { %2061 = vmatprep.subr.bf16.mxu0 %v2231_v13 }
0x1fc7   :  { %2062 = vmatpush3.bf16.msra.mxu0 %v2466_v63 }
0x2082   :  { %v1279_v44 = vpop.f32.mrf.mxu0 }
0x2083   :  { %v1285_v46 = vadd.f32 %v1279_v44, %v895_v43 }
0x2084   :  { %v2049_v47 = vpop.f32.mrf.mxu0 }
0x2085   :  { %v1832_v48 = vmul.f32 -1.442695, %v1285_v46 }
0x2086   :  { %v1282_v24 = vpop.f32.mrf.mxu0 }
0x2087   :  { %2199 = vpow2.f32 %v1832_v48 }
0x2088   :  { %v2050_v20 = vpop.f32.mrf.mxu0 }
0x2094   :  { %v2200_v49 = vpop.eup %2199 }
0x2095   :  { %v1289_v50 = vadd.f32 1.0, %v2200_v49 }
0x2097   :  { %2201 = vrcp.f32 %v1289_v50 }
0x20a4   :  { %v2202_v51 = vpop.eup %2201 }
0x20a5   :  { %v1292_v52 = vmul.f32 2.0, %v2202_v51  ;;  %v1294_v38 = vmul.f32 %v2202_v51, %v1223_v18 }
0x20a7   :  { %v1833_v53 = vadd.f32 -1.0, %v1292_v52 }
0x20a9   :  { %1296 = vrot.lane.b32.xlu1 %v1833_v53, %s2234_s16 }
0x211b   :  { %v1297_v2 = vpop.permute.xlu1 %1296 }
0x211c   :  { %v1299_v54 = vmul.f32 %v2202_v51, %v1297_v2 }
0x211e   :  { %1301 = vrot.lane.b32.xlu0 %v1299_v54, %s2235_s17 }
0x2190   :  { %v1302_v21 = vpop.permute.xlu0 %1301 }
0x2191   :  { %v1304_v55 = vadd.f32 %v1302_v21, %v1294_v38 }
0x2193   :  { %v1834_v60 = vmul.f32 -2.0, %v1304_v55 }
0x2195   :  { %v1307_v61 = vmul.f32 1.442695, %v1834_v60 }
0x2197   :  { %2203 = vpow2.f32 %v1307_v61 }
0x21a4   :  { %v2204_v56 = vpop.eup %2203 }
0x21a5   :  { %v1309_v62 = vadd.f32 1.0, %v2204_v56 }
0x21a7   :  { %2205 = vrcp.f32 %v1309_v62 }
0x21b4   :  { %v2206_v29 = vpop.eup %2205 }
0x21b5   :  { %v1312_v0 = vmul.f32 2.0, %v2206_v29 }
0x21b7   :  { %v1835_v1 = vadd.f32 -1.0, %v1312_v0 }
0x21b9   :  { %1315 = vrot.lane.b32.xlu1 %v1835_v1, %s2234_s16 }
0x222b   :  { %v1316_v4 = vpop.permute.xlu1 %1315 }
0x222c   :  { %v2596_v14 = vmul.f32 %v2202_v51, %v1316_v4 }
0x222e   :  { %v1319_v5 = vpack.c.bf16 %v2596_v14, %v2596_v14 }
0x2230   :  { %1321 = vrot.lane.b32.xlu0 %v1319_v5, %s2235_s17 }
0x22a2   :  { %v1322_v6 = vpop.permute.xlu0 %1321 }
0x22a3   :  { %2056 = vmatmul.mubr.msk.bf16.vlgmr.msra.gmra.mxu1 %vm142_vm2, %v1322_v6  ;;  %v906_v6 = vadd.f32 %v2554_v39, %v2491_v3  ;;  %v1565_v3 = vpack.c.bf16 %v2535_v34, %v2504_v45 }
0x22a4   :  { %2068 = vmatpush3.bf16.msra.mxu1 %v2459_v30  ;;  %2071 = vmatprep.mubr.msk.bf16.mxu1 %vm2232_vm1, %v2231_v13 }
0x22a5   :  { %2069 = vmatprep.subr.bf16.mxu1 %v2231_v13 }
0x22a8   :  { %2070 = vmatpush3.bf16.msra.mxu1 %v2466_v63 }
0x2363   :  { %v1360_v57 = vpop.f32.mrf.mxu1 }
0x2364   :  { %v1366_v23 = vadd.f32 %v1360_v57, %v898_v7 }
0x2365   :  { %v2057_v15 = vpop.f32.mrf.mxu1 }
0x2366   :  { %v1837_v8 = vmul.f32 -1.442695, %v1366_v23 }
0x2367   :  { %v1363_v9 = vpop.f32.mrf.mxu1 }
0x2368   :  { %2207 = vpow2.f32 %v1837_v8 }
0x2369   :  { %v2058_v28 = vpop.f32.mrf.mxu1 }
0x2375   :  { %v2208_v31 = vpop.eup %2207 }
0x2376   :  { %v1370_v10 = vadd.f32 1.0, %v2208_v31 }
0x2378   :  { %2209 = vrcp.f32 %v1370_v10 }
0x2385   :  { %v2210_v30 = vpop.eup %2209 }
0x2386   :  { %v1373_v11 = vmul.f32 2.0, %v2210_v30  ;;  %v1375_v40 = vmul.f32 %v2210_v30, %v1304_v55 }
0x2388   :  { %v1838_v27 = vadd.f32 -1.0, %v1373_v11 }
0x238a   :  { %1377 = vrot.lane.b32.xlu1 %v1838_v27, %s2234_s16 }
0x23fc   :  { %v1378_v13 = vpop.permute.xlu1 %1377 }
0x23fd   :  { %v1380_v63 = vmul.f32 %v2210_v30, %v1378_v13 }
0x23ff   :  { %1382 = vrot.lane.b32.xlu0 %v1380_v63, %s2235_s17  ;;  %v2101_v63 = vld [vmem:[%s2702_s3 + $0x8] sm:$0xff]  }
0x2400   :  { %2075 = vmatprep.subr.bf16.mxu0 %v2101_v63 }
0x2471   :  { %v1383_v12 = vpop.permute.xlu0 %1382 }
0x2472   :  { %v1385_v58 = vadd.f32 %v1383_v12, %v1375_v40 }
0x2474   :  { %v1839_v17 = vmul.f32 -2.0, %v1385_v58 }
0x2476   :  { %v1388_v18 = vmul.f32 1.442695, %v1839_v17 }
0x2478   :  { %2211 = vpow2.f32 %v1388_v18 }
0x2485   :  { %v2212_v19 = vpop.eup %2211 }
0x2486   :  { %v1390_v22 = vadd.f32 1.0, %v2212_v19 }
0x2488   :  { %2213 = vrcp.f32 %v1390_v22 }
0x2495   :  { %v2214_v25 = vpop.eup %2213 }
0x2496   :  { %v1393_v32 = vmul.f32 2.0, %v2214_v25 }
0x2498   :  { %v1840_v33 = vadd.f32 -1.0, %v1393_v32 }
0x249a   :  { %1396 = vrot.lane.b32.xlu1 %v1840_v33, %s2234_s16  ;;  %v1566_v33 = vpack.c.bf16 %v2580_v37, %v2563_v16  ;;  %v1851_v16 = vld [vmem:[%s2703_s4] ss:$0 sm:$0xff] }
0x250c   :  { %v1397_v26 = vpop.permute.xlu1 %1396 }
0x250d   :  { %v2612_v35 = vmul.f32 %v2210_v30, %v1397_v26 }
0x250f   :  { %v1400_v36 = vpack.c.bf16 %v2612_v35, %v2612_v35  ;;  %v1567_v39 = vpack.c.bf16 %v2612_v35, %v2596_v14  ;;  %v2102_v14 = vld [vmem:[%s2702_s3] sm:$0xff]  }
0x2511   :  { %1402 = vrot.lane.b32.xlu0 %v1400_v36, %s2235_s17 }
0x2583   :  { %v1403_v41 = vpop.permute.xlu0 %1402 }
0x2584   :  { %2064 = vmatmul.mubr.msk.bf16.vlgmr.msra.gmra.mxu0 %vm142_vm2, %v1403_v41 }
0x2585   :  { %2076 = vmatpush3.bf16.msra.mxu0 %v2101_v63 }
0x2586   :  { %2077 = vmatprep.subr.bf16.mxu0 %v2102_v14 }
0x2589   :  { %2078 = vmatpush3.bf16.msra.mxu0 %v2102_v14 }
0x2644   :  { %v1441_v43 = vpop.f32.mrf.mxu0 }
0x2645   :  { %v1447_v44 = vadd.f32 %v1441_v43, %v903_v42 }
0x2646   :  { %v2065_v46 = vpop.f32.mrf.mxu0 }
0x2647   :  { %v1842_v47 = vmul.f32 -1.442695, %v1447_v44 }
0x2648   :  { %v1444_v48 = vpop.f32.mrf.mxu0 }
0x2649   :  { %2215 = vpow2.f32 %v1842_v47 }
0x264a   :  { %v2066_v24 = vpop.f32.mrf.mxu0 }
0x2656   :  { %v2216_v20 = vpop.eup %2215 }
0x2657   :  { %v1451_v49 = vadd.f32 1.0, %v2216_v20 }
0x2659   :  { %2217 = vrcp.f32 %v1451_v49 }
0x2666   :  { %v2218_v50 = vpop.eup %2217 }
0x2667   :  { %v1454_v51 = vmul.f32 2.0, %v2218_v50  ;;  %v1456_v59 = vmul.f32 %v2218_v50, %v1385_v58 }
0x2669   :  { %v1843_v52 = vadd.f32 -1.0, %v1454_v51  ;;  %v1858_v51 = vld [vmem:[%s2703_s4 + $0x1] ss:$0 sm:$0xff] }
0x266b   :  { %1458 = vrot.lane.b32.xlu1 %v1843_v52, %s2234_s16 }
0x26dd   :  { %v1459_v53 = vpop.permute.xlu1 %1458 }
0x26de   :  { %v1461_v2 = vmul.f32 %v2218_v50, %v1459_v53 }
0x26e0   :  { %1463 = vrot.lane.b32.xlu0 %v1461_v2, %s2235_s17 }
0x2752   :  { %v1464_v54 = vpop.permute.xlu0 %1463 }
0x2753   :  { %v1466_v38 = vadd.f32 %v1464_v54, %v1456_v59 }
0x2755   :  { %v1844_v21 = vmul.f32 -2.0, %v1466_v38 }
0x2757   :  { %v1469_v55 = vmul.f32 1.442695, %v1844_v21 }
0x2759   :  { %2219 = vpow2.f32 %v1469_v55 }
0x2766   :  { %v2220_v60 = vpop.eup %2219 }
0x2767   :  { %v1471_v61 = vadd.f32 1.0, %v2220_v60 }
0x2769   :  { %2221 = vrcp.f32 %v1471_v61 }
0x2776   :  { %v2222_v56 = vpop.eup %2221 }
0x2777   :  { %v1474_v62 = vmul.f32 2.0, %v2222_v56 }
0x2779   :  { %v1845_v29 = vadd.f32 -1.0, %v1474_v62 }
0x277b   :  { %1477 = vrot.lane.b32.xlu1 %v1845_v29, %s2234_s16 }
0x27ed   :  { %v1478_v0 = vpop.permute.xlu1 %1477 }
0x27ee   :  { %v1480_v1 = vmul.f32 %v2218_v50, %v1478_v0 }
0x27f0   :  { %v1481_v4 = vpack.c.bf16 %v1480_v1, %v1480_v1 }
0x27f2   :  { %1483 = vrot.lane.b32.xlu0 %v1481_v4, %s2235_s17 }
0x2864   :  { %v1484_v5 = vpop.permute.xlu0 %1483 }
0x2865   :  { %2072 = vmatmul.mubr.msk.bf16.vlgmr.msra.gmra.mxu1 %vm142_vm2, %v1484_v5 }
0x2925   :  { %v1522_v7 = vpop.f32.mrf.mxu1 }
0x2926   :  { %v1528_v57 = vadd.f32 %v1522_v7, %v906_v6 }
0x2927   :  { %v2073_v23 = vpop.f32.mrf.mxu1 }
0x2928   :  { %v1847_v15 = vmul.f32 -1.442695, %v1528_v57 }
0x2929   :  { %v1525_v8 = vpop.f32.mrf.mxu1 }
0x292a   :  { %2223 = vpow2.f32 %v1847_v15 }
0x292b   :  { %v2074_v9 = vpop.f32.mrf.mxu1 }
0x2937   :  { %v2224_v28 = vpop.eup %2223 }
0x2938   :  { %v1532_v31 = vadd.f32 1.0, %v2224_v28 }
0x293a   :  { %2225 = vrcp.f32 %v1532_v31 }
0x2947   :  { %v2226_v10 = vpop.eup %2225 }
0x2948   :  { %v1535_v30 = vmul.f32 2.0, %v2226_v10  ;;  %v1537_v40 = vmul.f32 %v2226_v10, %v1466_v38 }
0x294a   :  { %v1848_v11 = vadd.f32 -1.0, %v1535_v30 }
0x294c   :  { %1539 = vrot.lane.b32.xlu1 %v1848_v11, %s2234_s16 }
0x29be   :  { %v1540_v27 = vpop.permute.xlu1 %1539 }
0x29bf   :  { %v1542_v13 = vmul.f32 %v2226_v10, %v1540_v27 }
0x29c1   :  { %1544 = vrot.lane.b32.xlu0 %v1542_v13, %s2235_s17 }
0x29c5   :  { %1581 = vrot.lane.b32.xlu0 %v1565_v3, %s2235_s17  ;;  %v1859_v3 = vld [vmem:[%s2703_s4 + $0x2] ss:$0 sm:$0xff] }
0x29c9   :  { %1585 = vrot.lane.b32.xlu0 %v1567_v39, %s2235_s17 }
0x2a33   :  { %v1545_v12 = vpop.permute.xlu0 %1544 }
0x2a34   :  { %v1547_v58 = vadd.f32 %v1545_v12, %v1537_v40 }
0x2a36   :  { %v1849_v17 = vmul.f32 -2.0, %v1547_v58 }
0x2a37   :  { %v1582_v18 = vpop.permute.xlu0 %1581 }
0x2a38   :  { %v1550_v19 = vmul.f32 1.442695, %v1849_v17  ;;  %2079 = vmatprep.mubr.msk.bf16.mxu0 %vm142_vm2, %v1582_v18 }
0x2a3a   :  { %2227 = vpow2.f32 %v1550_v19 }
0x2a3b   :  { %v1586_v42 = vpop.permute.xlu0 %1585 }
0x2a47   :  { %v2228_v45 = vpop.eup %2227 }
0x2a48   :  { %v1552_v34 = vadd.f32 1.0, %v2228_v45 }
0x2a4a   :  { %2229 = vrcp.f32 %v1552_v34 }
0x2a57   :  { %v2230_v22 = vpop.eup %2229 }
0x2a58   :  { %v1555_v25 = vmul.f32 2.0, %v2230_v22 }
0x2a5a   :  { %v1850_v32 = vadd.f32 -1.0, %v1555_v25 }
0x2a5c   :  { %1558 = vrot.lane.b32.xlu1 %v1850_v32, %s2234_s16 }
0x2a60   :  { %1583 = vrot.lane.b32.xlu1 %v1566_v33, %s2235_s17 }
0x2ace   :  { %v1559_v26 = vpop.permute.xlu1 %1558 }
0x2acf   :  { %v1561_v35 = vmul.f32 %v2226_v10, %v1559_v26 }
0x2ad1   :  { %v1568_v36 = vpack.c.bf16 %v1561_v35, %v1480_v1 }
0x2ad2   :  { %v1584_v41 = vpop.permute.xlu1 %1583 }
0x2ad3   :  { %1587 = vrot.lane.b32.xlu1 %v1568_v36, %s2235_s17  ;;  %2080 = vmatmul.mubr.msk.bf16.vlgmr.msra.gmra.mxu0 %vm142_vm2, %v1584_v41 }
0x2ad4   :  { %2083 = vmatprep.mubr.msk.bf16.mxu0 %vm142_vm2, %v1586_v42 }
0x2b45   :  { %v1588_v43 = vpop.permute.xlu1 %1587 }
0x2b46   :  { %2084 = vmatmul.mubr.msk.bf16.gmra.mxu0 %vm142_vm2, %v1588_v43 }
0x2b93   :  { %v2081_v37 = vpop.f32.mrf.mxu0 }
0x2b94   :  { %v1656_v44 = vadd.f32 %v2081_v37, %v1851_v16 }
0x2b95   :  { %v1647_v46 = vpop.f32.mrf.mxu0 }
0x2b96   :  { %v1648_v47 = vadd.f32 %v1851_v16, %v1647_v46  ;;  %v1680_v24 = vmax.f32 %v1656_v44, 0.0 }
0x2b97   :  { %v2082_v48 = vpop.f32.mrf.mxu0 }
0x2b98   :  { %v1678_v20 = vmax.f32 %v1648_v47, 0.0  ;;  %v1659_v49 = vadd.f32 %v2082_v48, %v1851_v16  ;;  %v1692_v38 = vmul.f32 %v1858_v51, %v1680_v24 }
0x2b99   :  { %v1650_v50 = vpop.f32.mrf.mxu0 }
0x2b9a   :  { %v1651_v52 = vadd.f32 %v1851_v16, %v1650_v50  ;;  %v1690_v53 = vmul.f32 %v1858_v51, %v1678_v20  ;;  %v1681_v2 = vmax.f32 %v1659_v49, 0.0  ;;  %v1704_v60 = vsel %vm52_vm0, %v1692_v38, 0.0 }
0x2b9c   :  { %v1679_v59 = vmax.f32 %v1651_v52, 0.0  ;;  %v1698_v54 = vsel %vm52_vm0, %v1690_v53, 0.0  ;;  %v1693_v61 = vmul.f32 %v1858_v51, %v1681_v2 }
0x2b9d   :  { %1699 = vadd.xlane.f32.xlu0 %v1698_v54 }
0x2b9e   :  { %v1691_v21 = vmul.f32 %v1858_v51, %v1679_v59  ;;  %v1707_v56 = vsel %vm52_vm0, %v1693_v61, 0.0 }
0x2ba0   :  { %v1701_v55 = vsel %vm52_vm0, %v1691_v21, 0.0 }
0x2ba1   :  { %1702 = vadd.xlane.f32.xlu1 %v1701_v55  ;;  %1705 = vadd.xlane.f32.xlu0 %v1704_v60 }
0x2ba5   :  { %1708 = vadd.xlane.f32.xlu0 %v1707_v56 }
0x2c06   :  { %v2085_v62 = vpop.f32.mrf.mxu0 }
0x2c07   :  { %v1672_v29 = vadd.f32 %v2085_v62, %v1851_v16 }
0x2c08   :  { %v1663_v0 = vpop.f32.mrf.mxu0 }
0x2c09   :  { %v1664_v1 = vadd.f32 %v1851_v16, %v1663_v0  ;;  %v1684_v5 = vmax.f32 %v1672_v29, 0.0 }
0x2c0a   :  { %v2086_v4 = vpop.f32.mrf.mxu0 }
0x2c0b   :  { %v1682_v6 = vmax.f32 %v1664_v1, 0.0  ;;  %v1675_v7 = vadd.f32 %v2086_v4, %v1851_v16  ;;  %v1696_v31 = vmul.f32 %v1858_v51, %v1684_v5 }
0x2c0c   :  { %v1666_v57 = vpop.f32.mrf.mxu0 }
0x2c0d   :  { %v1667_v23 = vadd.f32 %v1851_v16, %v1666_v57  ;;  %v1694_v15 = vmul.f32 %v1858_v51, %v1682_v6  ;;  %v1685_v8 = vmax.f32 %v1675_v7, 0.0  ;;  %v1716_v11 = vsel %vm52_vm0, %v1696_v31, 0.0 }
0x2c0f   :  { %v1683_v9 = vmax.f32 %v1667_v23, 0.0  ;;  %v1710_v28 = vsel %vm52_vm0, %v1694_v15, 0.0  ;;  %v1697_v27 = vmul.f32 %v1858_v51, %v1685_v8 }
0x2c10   :  { %1711 = vadd.xlane.f32.xlu1 %v1710_v28 }
0x2c11   :  { %v1695_v10 = vmul.f32 %v1858_v51, %v1683_v9  ;;  %v1719_v13 = vsel %vm52_vm0, %v1697_v27, 0.0 }
0x2c13   :  { %v1713_v30 = vsel %vm52_vm0, %v1695_v10, 0.0 }
0x2c14   :  { %1714 = vadd.xlane.f32.xlu0 %v1713_v30  ;;  %1717 = vadd.xlane.f32.xlu1 %v1716_v11 }
0x2c18   :  { %1720 = vadd.xlane.f32.xlu0 %v1719_v13 }
0x2c26   :  { %v1700_v39 = vpop.xlane.xlu0 %1699 }
0x2c27   :  { %v1726_v63 = vadd.f32 %v1859_v3, %v1700_v39 }
0x2c29   :  { %1735 = vst.msk [vmem:[%s2704_s5] sm:$0xff] %vm1734_vm3, %v1726_v63 }
0x2c2a   :  { %v1703_v40 = vpop.xlane.xlu1 %1702  ;;  %v1706_v12 = vpop.xlane.xlu0 %1705 }
0x2c2b   :  { %v1727_v58 = vadd.f32 %v1859_v3, %v1703_v40  ;;  %v1728_v17 = vadd.f32 %v1859_v3, %v1706_v12 }
0x2c2d   :  { %1736 = vst.msk [vmem:[%s2704_s5 + $0x8] sm:$0xff] %vm1734_vm3, %v1727_v58  ;;  %1737 = vst.msk [vmem:[%s2704_s5 + $0x10] sm:$0xff] %vm1734_vm3, %v1728_v17 }
0x2c2e   :  { %v1709_v18 = vpop.xlane.xlu0 %1708 }
0x2c2f   :  { %v1729_v19 = vadd.f32 %v1859_v3, %v1709_v18 }
0x2c31   :  { %1738 = vst.msk [vmem:[%s2704_s5 + $0x18] sm:$0xff] %vm1734_vm3, %v1729_v19 }
0x2c99   :  { %v1712_v45 = vpop.xlane.xlu1 %1711 }
0x2c9a   :  { %v1730_v34 = vadd.f32 %v1859_v3, %v1712_v45 }
0x2c9c   :  { %1739 = vst.msk [vmem:[%s2704_s5 + $0x20] sm:$0xff] %vm1734_vm3, %v1730_v34 }
0x2c9d   :  { %v1718_v14 = vpop.xlane.xlu1 %1717  ;;  %v1715_v22 = vpop.xlane.xlu0 %1714 }
0x2c9e   :  { %v1732_v25 = vadd.f32 %v1859_v3, %v1718_v14  ;;  %v1731_v32 = vadd.f32 %v1859_v3, %v1715_v22 }
0x2ca0   :  { %1741 = vst.msk [vmem:[%s2704_s5 + $0x30] sm:$0xff] %vm1734_vm3, %v1732_v25  ;;  %1740 = vst.msk [vmem:[%s2704_s5 + $0x28] sm:$0xff] %vm1734_vm3, %v1731_v32 }
0x2ca1   :  { %v1721_v33 = vpop.xlane.xlu0 %1720 }
0x2ca2   :  { %v1733_v26 = vadd.f32 %v1859_v3, %v1721_v33 }
0x2ca4   :  { %1742 = vst.msk [vmem:[%s2704_s5 + $0x38] sm:$0xff] %vm1734_vm3, %v1733_v26 }

</bundles_post_ra>
